<compile_context>
chip_gen: v5e
topology: v5e:2x2
jax: 0.10.0
libtpu: 0.0.40
codegen_flags: <defaults>
</compile_context>

<pallas_src>
import jax
import jax.numpy as jnp
import numpy as np
from jax import lax
from jax.experimental import pallas as pl
from jax.experimental.pallas import tpu as pltpu

# --- static problem sizes (fc1 = Linear(2048, 1024) forces 14x14 input -> 4x4 pool) ---
N = 2
C_IN = 8
H = W = 14
PH = PW = 4                # AvgPool2d(kernel_size=5, stride=3): (14-5)//3 + 1 = 4
PP = PH * PW               # 16 pooled positions
C_MID = 128                # BasicConvBlock output channels
FEAT = C_MID * PP          # 2048
HID = 1024
NUM_CLASSES = 10
BN_EPS = 0.01

NUM_K = 4                  # fc1 contraction chunks (grid size)
KC = FEAT // NUM_K         # 512 rows of w1 per chunk (1 MiB bf16 per chunk)


# ----------------------------- fused Pallas kernel -----------------------------

def inception_aux_kernel(x_ref, pmat_ref, wct_ref, scale_ref, shift_ref,
                         w1_ref, b1_ref, w2_ref, b2_ref, out_ref,
                         lhs_ref, acc_ref):
    """avgpool -> 1x1 conv -> BN(eval) -> ReLU -> flatten -> fc1 -> ReLU -> fc2,
    with the fc1 contraction tiled over the grid (w1 streams chunk-by-chunk)."""
    k = pl.program_id(0)

    # --- grid step 0: pool -> conv -> BN -> ReLU, build bf16 LHS, zero accumulator ---
    @pl.when(k == 0)
    def _prologue():
        acc_ref[...] = jnp.zeros_like(acc_ref)
        for n in range(N):                                        # N tiny -> static unroll
            x_n = x_ref[n]                                        # (C_IN, H*W) lane-dense
            # pooled_t[p, c] = sum_hw pmat[p, hw] * x_n[c, hw]   (A @ B.T on the MXU)
            pooled_t = lax.dot_general(
                pmat_ref[...], x_n, (((1,), (1,)), ((), ())),
                preferred_element_type=jnp.float32)               # (PP, C_IN) = (16, 8)
            conv_t = jnp.dot(pooled_t, wct_ref[...],
                             preferred_element_type=jnp.float32)  # (PP, C_MID) = (16, 128)
            act = jnp.maximum(conv_t * scale_ref[...] + shift_ref[...], 0.0)
            # position-major flatten, pre-split into the NUM_K contraction chunks
            lhs_ref[:, n, :] = act.reshape(NUM_K, KC).astype(jnp.bfloat16)

    # --- every grid step: one K-chunk of fc1, pipelined against the w1 HBM stream ---
    acc_ref[...] += jnp.dot(lhs_ref[k], w1_ref[...],
                            preferred_element_type=jnp.float32)   # (N, HID) f32

    # --- last grid step: bias + ReLU + (dropout = identity in eval) + fc2 + store ---
    @pl.when(k == pl.num_programs(0) - 1)
    def _epilogue():
        h = jnp.maximum(acc_ref[...] + b1_ref[...], 0.0)
        # TODO(synk): nn.Dropout(p=0.7) is identity in eval mode; no training-mode RNG path.
        logits = jnp.dot(h.astype(jnp.bfloat16), w2_ref[...],
                         preferred_element_type=jnp.float32) + b2_ref[...]
        out_ref[...] = logits.astype(out_ref.dtype)


# ------------------------------ host-side glue ------------------------------

def build_pool_matrix_t():
    """(PP, H*W) matrix s.t. pooled_t = P_t @ x_hw_flat == AvgPool2d(5, stride=3)."""
    p = np.zeros((PP, H * W), np.float32)
    for oh in range(PH):
        for ow in range(PW):
            for ih in range(oh * 3, oh * 3 + 5):
                for iw in range(ow * 3, ow * 3 + 5):
                    p[oh * PW + ow, ih * W + iw] = 1.0 / 25.0
    return jnp.asarray(p)


def prepare_params(wc, scale_v, shift_v, w1, b1, w2, b2):
    """One-time host-side layout prep (transpose / permute / bf16 cast)."""
    pmat_t = build_pool_matrix_t()                         # (PP, H*W)
    wct = wc.T                                             # (C_IN, C_MID)
    scale = scale_v.reshape(1, C_MID)                      # (1, 128) lane vector
    shift = shift_v.reshape(1, C_MID)
    # PyTorch flatten is channel-major (index c*PP + p); the kernel's LHS is
    # position-major (index p*C_MID + c), so permute fc1 rows once and store bf16.
    w1_pm = (w1.reshape(C_MID, PP, HID).transpose(1, 0, 2)
               .reshape(FEAT, HID).astype(jnp.bfloat16))   # (2048, 1024) bf16
    w2_bf = w2.astype(jnp.bfloat16)
    return pmat_t, wct, scale, shift, w1_pm, b1, w2_bf, b2


def inception_aux_forward(x, params):
    pmat_t, wct, scale, shift, w1_pm, b1, w2_bf, b2 = params
    assert x.shape == (N, C_IN, H, W)
    x3 = x.reshape(N, C_IN, H * W)                         # spatial axis -> lanes (196)

    grid_spec = pltpu.PrefetchScalarGridSpec(
        num_scalar_prefetch=0,
        grid=(NUM_K,),
        in_specs=[
            pl.BlockSpec((N, C_IN, H * W), lambda k: (0, 0, 0)),   # x (resident)
            pl.BlockSpec((PP, H * W), lambda k: (0, 0)),           # pool matrix
            pl.BlockSpec((C_IN, C_MID), lambda k: (0, 0)),         # conv weight^T
            pl.BlockSpec((1, C_MID), lambda k: (0, 0)),            # BN scale
            pl.BlockSpec((1, C_MID), lambda k: (0, 0)),            # BN shift
            pl.BlockSpec((KC, HID), lambda k: (k, 0)),             # w1 chunk (streamed)
            pl.BlockSpec((1, HID), lambda k: (0, 0)),              # b1
            pl.BlockSpec((HID, NUM_CLASSES), lambda k: (0, 0)),    # w2
            pl.BlockSpec((1, NUM_CLASSES), lambda k: (0, 0)),      # b2
        ],
        out_specs=pl.BlockSpec((N, NUM_CLASSES), lambda k: (0, 0)),
        scratch_shapes=[
            pltpu.VMEM((NUM_K, N, KC), jnp.bfloat16),              # cached fc1 LHS (8 KiB)
            pltpu.VMEM((N, HID), jnp.float32),                     # fc1 accumulator (8 KiB)
        ],
    )

    return pl.pallas_call(
        inception_aux_kernel,
        out_shape=jax.ShapeDtypeStruct((N, NUM_CLASSES), jnp.float32),
        grid_spec=grid_spec,
        compiler_params=pltpu.CompilerParams(dimension_semantics=("arbitrary",)),
        cost_estimate=pl.CostEstimate(flops=8_600_000, transcendentals=0,
                                      bytes_accessed=4_400_000),
    )(x3, pmat_t, wct, scale, shift, w1_pm, b1, w2_bf, b2)


# ------------------------- pure-JAX reference (f32) -------------------------

def reference_forward(x, wc, scale_v, shift_v, w1, b1, w2, b2):
    """Matches the PyTorch forward (eval-mode BN / dropout), full f32."""
    pooled = jnp.stack(
        [jnp.stack(
            [jnp.mean(x[:, :, oh * 3:oh * 3 + 5, ow * 3:ow * 3 + 5], axis=(2, 3))
             for ow in range(PW)], axis=-1)
         for oh in range(PH)], axis=-2)                                  # (N, C_IN, 4, 4)
    conv = jnp.einsum('oc,nchw->nohw', wc, pooled)                       # (N, 128, 4, 4)
    act = jnp.maximum(conv * scale_v.reshape(1, C_MID, 1, 1)
                      + shift_v.reshape(1, C_MID, 1, 1), 0.0)
    feat = act.reshape(x.shape[0], -1)                                   # channel-major (N, 2048)
    h = jnp.maximum(feat @ w1 + b1, 0.0)
    return h @ w2 + b2


# ----------------------------------- main -----------------------------------

if __name__ == "__main__":
    key = jax.random.PRNGKey(0)
    ks = jax.random.split(key, 10)

    x = jax.random.normal(ks[0], (N, C_IN, H, W), jnp.float32)

    # Conv2d(C_IN, 128, kernel_size=1, bias=False) weight -> (128, C_IN)
    wc = 0.1 * jax.random.normal(ks[1], (C_MID, C_IN), jnp.float32)

    # BatchNorm2d(128, eps=0.01): eval-mode stats folded into per-channel scale/shift
    gamma = 1.0 + 0.1 * jax.random.normal(ks[2], (C_MID,), jnp.float32)
    beta = 0.1 * jax.random.normal(ks[3], (C_MID,), jnp.float32)
    r_mean = 0.1 * jax.random.normal(ks[4], (C_MID,), jnp.float32)
    r_var = jax.random.uniform(ks[5], (C_MID,), jnp.float32, minval=0.5, maxval=1.5)
    scale_v = gamma / jnp.sqrt(r_var + BN_EPS)
    shift_v = beta - r_mean * scale_v

    # fc1: Linear(2048, 1024), fc2: Linear(1024, num_classes) (stored pre-transposed: x @ w)
    w1 = jax.random.normal(ks[6], (FEAT, HID), jnp.float32) / np.sqrt(FEAT)
    b1 = 0.01 * jax.random.normal(ks[7], (1, HID), jnp.float32)
    w2 = jax.random.normal(ks[8], (HID, NUM_CLASSES), jnp.float32) / np.sqrt(HID)
    b2 = 0.01 * jax.random.normal(ks[9], (1, NUM_CLASSES), jnp.float32)

    params = prepare_params(wc, scale_v, shift_v, w1, b1, w2, b2)

    out = inception_aux_forward(x, params)
    out = jax.block_until_ready(out)

    ref = reference_forward(x, wc, scale_v, shift_v, w1, b1, w2, b2)
    assert out.shape == (N, NUM_CLASSES)
    # fc1/fc2 weights & activations are bf16 in the kernel (f32 accumulation); the
    # reference is full f32, so use a bf16-appropriate tolerance (~1e-3 observed error).
    assert jnp.allclose(out, ref, rtol=1e-2, atol=1e-2), "mismatch vs. pure-JAX reference"

    print("KERNEL_OK")
</pallas_src>

<mosaic_0001>
module attributes {stable_mosaic.version = 11 : i64} {
  func.func @inception_aux_kernel(%arg0: i32, %arg1: memref<2x8x196xf32, #tpu.memory_space<vmem>>, %arg2: memref<16x196xf32, #tpu.memory_space<vmem>>, %arg3: memref<8x128xf32, #tpu.memory_space<vmem>>, %arg4: memref<1x128xf32, #tpu.memory_space<vmem>>, %arg5: memref<1x128xf32, #tpu.memory_space<vmem>>, %arg6: memref<512x1024xbf16, #tpu.memory_space<vmem>>, %arg7: memref<1x1024xf32, #tpu.memory_space<vmem>>, %arg8: memref<1024x10xbf16, #tpu.memory_space<vmem>>, %arg9: memref<1x10xf32, #tpu.memory_space<vmem>>, %arg10: memref<2x10xf32, #tpu.memory_space<vmem>>, %arg11: memref<4x2x512xbf16, #tpu.memory_space<vmem>>, %arg12: memref<2x1024xf32, #tpu.memory_space<vmem>>) attributes {dimension_semantics = [#tpu.dimension_semantics<arbitrary>], iteration_bounds = array<i64: 4>, scalar_prefetch = 0 : i64, scratch_operands = 2 : i64, tpu.core_type = #tpu.core_type<tc>, window_params = [{pipeline_mode = #tpu.pipeline_mode<synchronous>, transform_indices = @transform_0, window_bounds = array<i64: 2, 8, 196>}, {pipeline_mode = #tpu.pipeline_mode<synchronous>, transform_indices = @transform_1, window_bounds = array<i64: 16, 196>}, {pipeline_mode = #tpu.pipeline_mode<synchronous>, transform_indices = @transform_2, window_bounds = array<i64: 8, 128>}, {pipeline_mode = #tpu.pipeline_mode<synchronous>, transform_indices = @transform_3, window_bounds = array<i64: 1, 128>}, {pipeline_mode = #tpu.pipeline_mode<synchronous>, transform_indices = @transform_4, window_bounds = array<i64: 1, 128>}, {transform_indices = @transform_5, window_bounds = array<i64: 512, 1024>}, {pipeline_mode = #tpu.pipeline_mode<synchronous>, transform_indices = @transform_6, window_bounds = array<i64: 1, 1024>}, {pipeline_mode = #tpu.pipeline_mode<synchronous>, transform_indices = @transform_7, window_bounds = array<i64: 1024, 10>}, {pipeline_mode = #tpu.pipeline_mode<synchronous>, transform_indices = @transform_8, window_bounds = array<i64: 1, 10>}, {pipeline_mode = #tpu.pipeline_mode<synchronous>, transform_indices = @transform_9, window_bounds = array<i64: 2, 10>}]} {
    %c0_i32 = arith.constant 0 : i32
    %0 = arith.cmpi eq, %arg0, %c0_i32 : i32
    %1 = arith.extui %0 : i1 to i32
    %c0_i32_0 = arith.constant 0 : i32
    %2 = arith.cmpi ne, %1, %c0_i32_0 : i32
    scf.if %2 {
      %cst_9 = arith.constant 0.000000e+00 : f32
      %14 = vector.broadcast %cst_9 : f32 to vector<2x1024xf32>
      %c0_10 = arith.constant 0 : index
      %c0_11 = arith.constant 0 : index
      %15 = vector.load %arg12[%c0_10, %c0_11] : memref<2x1024xf32, #tpu.memory_space<vmem>>, vector<2x1024xf32>
      tpu.vector_store %arg12[%c0_10, %c0_11], %14 {strides = array<i32>} : memref<2x1024xf32, #tpu.memory_space<vmem>>, vector<2x1024xf32>,
      %c0_12 = arith.constant 0 : index
      %c0_13 = arith.constant 0 : index
      %c0_14 = arith.constant 0 : index
      %16 = vector.load %arg1[%c0_12, %c0_13, %c0_14] : memref<2x8x196xf32, #tpu.memory_space<vmem>>, vector<1x8x196xf32>
      %17 = vector.shape_cast %16 : vector<1x8x196xf32> to vector<8x196xf32>
      %c0_15 = arith.constant 0 : index
      %c0_16 = arith.constant 0 : index
      %18 = vector.load %arg2[%c0_15, %c0_16] : memref<16x196xf32, #tpu.memory_space<vmem>>, vector<16x196xf32>
      %cst_17 = arith.constant dense<0.000000e+00> : vector<16x8xf32>
      %19 = tpu.matmul %18, %17, %cst_17 {dimension_numbers = #tpu.dot_dimension_numbers<[1], [1], [0], [0], [0, 0, 1, 0], [], []>} : vector<16x196xf32>, vector<8x196xf32>, vector<16x8xf32> -> vector<16x8xf32>
      %c0_18 = arith.constant 0 : index
      %c0_19 = arith.constant 0 : index
      %20 = vector.load %arg3[%c0_18, %c0_19] : memref<8x128xf32, #tpu.memory_space<vmem>>, vector<8x128xf32>
      %cst_20 = arith.constant dense<0.000000e+00> : vector<16x128xf32>
      %21 = tpu.matmul %19, %20, %cst_20 {dimension_numbers = #tpu.dot_dimension_numbers<[1], [0], [0], [1], [0, 0, 1, 1], [], []>} : vector<16x8xf32>, vector<8x128xf32>, vector<16x128xf32> -> vector<16x128xf32>
      %c0_21 = arith.constant 0 : index
      %c0_22 = arith.constant 0 : index
      %22 = vector.load %arg4[%c0_21, %c0_22] : memref<1x128xf32, #tpu.memory_space<vmem>>, vector<1x128xf32>
      %23 = vector.broadcast %22 : vector<1x128xf32> to vector<16x128xf32>
      %24 = arith.mulf %21, %23 : vector<16x128xf32>
      %c0_23 = arith.constant 0 : index
      %c0_24 = arith.constant 0 : index
      %25 = vector.load %arg5[%c0_23, %c0_24] : memref<1x128xf32, #tpu.memory_space<vmem>>, vector<1x128xf32>
      %26 = vector.broadcast %25 : vector<1x128xf32> to vector<16x128xf32>
      %27 = arith.addf %24, %26 : vector<16x128xf32>
      %cst_25 = arith.constant 0.000000e+00 : f32
      %28 = vector.broadcast %cst_25 : f32 to vector<16x128xf32>
      %29 = arith.maximumf %27, %28 : vector<16x128xf32>
      %30 = vector.shape_cast %29 : vector<16x128xf32> to vector<4x512xf32>
      %31 = arith.truncf %30 : vector<4x512xf32> to vector<4x512xbf16>
      %c0_26 = arith.constant 0 : index
      %c0_27 = arith.constant 0 : index
      %c0_28 = arith.constant 0 : index
      %32 = vector.load %arg11[%c0_26, %c0_27, %c0_28] : memref<4x2x512xbf16, #tpu.memory_space<vmem>>, vector<4x1x512xbf16>
      %33 = vector.shape_cast %32 : vector<4x1x512xbf16> to vector<4x512xbf16>
      %34 = vector.shape_cast %31 : vector<4x512xbf16> to vector<4x1x512xbf16>
      tpu.vector_store %arg11[%c0_26, %c0_27, %c0_28], %34 {strides = array<i32>} : memref<4x2x512xbf16, #tpu.memory_space<vmem>>, vector<4x1x512xbf16>,
      %c1 = arith.constant 1 : index
      %c0_29 = arith.constant 0 : index
      %c0_30 = arith.constant 0 : index
      %35 = vector.load %arg1[%c1, %c0_29, %c0_30] : memref<2x8x196xf32, #tpu.memory_space<vmem>>, vector<1x8x196xf32>
      %36 = vector.shape_cast %35 : vector<1x8x196xf32> to vector<8x196xf32>
      %c0_31 = arith.constant 0 : index
      %c0_32 = arith.constant 0 : index
      %37 = vector.load %arg2[%c0_31, %c0_32] : memref<16x196xf32, #tpu.memory_space<vmem>>, vector<16x196xf32>
      %cst_33 = arith.constant dense<0.000000e+00> : vector<16x8xf32>
      %38 = tpu.matmul %37, %36, %cst_33 {dimension_numbers = #tpu.dot_dimension_numbers<[1], [1], [0], [0], [0, 0, 1, 0], [], []>} : vector<16x196xf32>, vector<8x196xf32>, vector<16x8xf32> -> vector<16x8xf32>
      %c0_34 = arith.constant 0 : index
      %c0_35 = arith.constant 0 : index
      %39 = vector.load %arg3[%c0_34, %c0_35] : memref<8x128xf32, #tpu.memory_space<vmem>>, vector<8x128xf32>
      %cst_36 = arith.constant dense<0.000000e+00> : vector<16x128xf32>
      %40 = tpu.matmul %38, %39, %cst_36 {dimension_numbers = #tpu.dot_dimension_numbers<[1], [0], [0], [1], [0, 0, 1, 1], [], []>} : vector<16x8xf32>, vector<8x128xf32>, vector<16x128xf32> -> vector<16x128xf32>
      %c0_37 = arith.constant 0 : index
      %c0_38 = arith.constant 0 : index
      %41 = vector.load %arg4[%c0_37, %c0_38] : memref<1x128xf32, #tpu.memory_space<vmem>>, vector<1x128xf32>
      %42 = vector.broadcast %41 : vector<1x128xf32> to vector<16x128xf32>
      %43 = arith.mulf %40, %42 : vector<16x128xf32>
      %c0_39 = arith.constant 0 : index
      %c0_40 = arith.constant 0 : index
      %44 = vector.load %arg5[%c0_39, %c0_40] : memref<1x128xf32, #tpu.memory_space<vmem>>, vector<1x128xf32>
      %45 = vector.broadcast %44 : vector<1x128xf32> to vector<16x128xf32>
      %46 = arith.addf %43, %45 : vector<16x128xf32>
      %cst_41 = arith.constant 0.000000e+00 : f32
      %47 = vector.broadcast %cst_41 : f32 to vector<16x128xf32>
      %48 = arith.maximumf %46, %47 : vector<16x128xf32>
      %49 = vector.shape_cast %48 : vector<16x128xf32> to vector<4x512xf32>
      %50 = arith.truncf %49 : vector<4x512xf32> to vector<4x512xbf16>
      %c0_42 = arith.constant 0 : index
      %c1_43 = arith.constant 1 : index
      %c0_44 = arith.constant 0 : index
      %51 = vector.load %arg11[%c0_42, %c1_43, %c0_44] : memref<4x2x512xbf16, #tpu.memory_space<vmem>>, vector<4x1x512xbf16>
      %52 = vector.shape_cast %51 : vector<4x1x512xbf16> to vector<4x512xbf16>
      %53 = vector.shape_cast %50 : vector<4x512xbf16> to vector<4x1x512xbf16>
      tpu.vector_store %arg11[%c0_42, %c1_43, %c0_44], %53 {strides = array<i32>} : memref<4x2x512xbf16, #tpu.memory_space<vmem>>, vector<4x1x512xbf16>,
    } else {
    }
    %c0 = arith.constant 0 : index
    %c0_1 = arith.constant 0 : index
    %3 = vector.load %arg12[%c0, %c0_1] : memref<2x1024xf32, #tpu.memory_space<vmem>>, vector<2x1024xf32>
    %4 = arith.index_cast %arg0 : i32 to index
    %c0_2 = arith.constant 0 : index
    %c0_3 = arith.constant 0 : index
    %5 = vector.load %arg11[%4, %c0_2, %c0_3] : memref<4x2x512xbf16, #tpu.memory_space<vmem>>, vector<1x2x512xbf16>
    %6 = vector.shape_cast %5 : vector<1x2x512xbf16> to vector<2x512xbf16>
    %c0_4 = arith.constant 0 : index
    %c0_5 = arith.constant 0 : index
    %7 = vector.load %arg6[%c0_4, %c0_5] : memref<512x1024xbf16, #tpu.memory_space<vmem>>, vector<512x1024xbf16>
    %cst = arith.constant dense<0.000000e+00> : vector<2x1024xf32>
    %8 = tpu.matmul %6, %7, %cst {dimension_numbers = #tpu.dot_dimension_numbers<[1], [0], [0], [1], [0, 0, 1, 1], [], []>} : vector<2x512xbf16>, vector<512x1024xbf16>, vector<2x1024xf32> -> vector<2x1024xf32>
    %9 = arith.addf %3, %8 : vector<2x1024xf32>
    %c0_6 = arith.constant 0 : index
    %c0_7 = arith.constant 0 : index
    %10 = vector.load %arg12[%c0_6, %c0_7] : memref<2x1024xf32, #tpu.memory_space<vmem>>, vector<2x1024xf32>
    tpu.vector_store %arg12[%c0_6, %c0_7], %9 {strides = array<i32>} : memref<2x1024xf32, #tpu.memory_space<vmem>>, vector<2x1024xf32>,
    %c3_i32 = arith.constant 3 : i32
    %11 = arith.cmpi eq, %arg0, %c3_i32 : i32
    %12 = arith.extui %11 : i1 to i32
    %c0_i32_8 = arith.constant 0 : i32
    %13 = arith.cmpi ne, %12, %c0_i32_8 : i32
    scf.if %13 {
      %c0_9 = arith.constant 0 : index
      %c0_10 = arith.constant 0 : index
      %14 = vector.load %arg12[%c0_9, %c0_10] : memref<2x1024xf32, #tpu.memory_space<vmem>>, vector<2x1024xf32>
      %c0_11 = arith.constant 0 : index
      %c0_12 = arith.constant 0 : index
      %15 = vector.load %arg7[%c0_11, %c0_12] : memref<1x1024xf32, #tpu.memory_space<vmem>>, vector<1x1024xf32>
      %16 = vector.broadcast %15 : vector<1x1024xf32> to vector<2x1024xf32>
      %17 = arith.addf %14, %16 : vector<2x1024xf32>
      %cst_13 = arith.constant 0.000000e+00 : f32
      %18 = vector.broadcast %cst_13 : f32 to vector<2x1024xf32>
      %19 = arith.maximumf %17, %18 : vector<2x1024xf32>
      %20 = arith.truncf %19 : vector<2x1024xf32> to vector<2x1024xbf16>
      %c0_14 = arith.constant 0 : index
      %c0_15 = arith.constant 0 : index
      %21 = vector.load %arg8[%c0_14, %c0_15] : memref<1024x10xbf16, #tpu.memory_space<vmem>>, vector<1024x10xbf16>
      %cst_16 = arith.constant dense<0.000000e+00> : vector<2x10xf32>
      %22 = tpu.matmul %20, %21, %cst_16 {dimension_numbers = #tpu.dot_dimension_numbers<[1], [0], [0], [1], [0, 0, 1, 1], [], []>} : vector<2x1024xbf16>, vector<1024x10xbf16>, vector<2x10xf32> -> vector<2x10xf32>
      %c0_17 = arith.constant 0 : index
      %c0_18 = arith.constant 0 : index
      %23 = vector.load %arg9[%c0_17, %c0_18] : memref<1x10xf32, #tpu.memory_space<vmem>>, vector<1x10xf32>
      %24 = vector.broadcast %23 : vector<1x10xf32> to vector<2x10xf32>
      %25 = arith.addf %22, %24 : vector<2x10xf32>
      %c0_19 = arith.constant 0 : index
      %c0_20 = arith.constant 0 : index
      %26 = vector.load %arg10[%c0_19, %c0_20] : memref<2x10xf32, #tpu.memory_space<vmem>>, vector<2x10xf32>
      tpu.vector_store %arg10[%c0_19, %c0_20], %25 {strides = array<i32>} : memref<2x10xf32, #tpu.memory_space<vmem>>, vector<2x10xf32>,
    } else {
    }
    return
  }
  func.func @transform_0(%arg0: i32) -> (i32, i32, i32) {
    %c0_i32 = arith.constant 0 : i32
    %c0_i32_0 = arith.constant 0 : i32
    %c0_i32_1 = arith.constant 0 : i32
    %c0_i32_2 = arith.constant 0 : i32
    return %c0_i32, %c0_i32_0, %c0_i32_1 : i32, i32, i32
  }
  func.func @transform_1(%arg0: i32) -> (i32, i32) {
    %c0_i32 = arith.constant 0 : i32
    %c0_i32_0 = arith.constant 0 : i32
    %c0_i32_1 = arith.constant 0 : i32
    return %c0_i32, %c0_i32_0 : i32, i32
  }
  func.func @transform_2(%arg0: i32) -> (i32, i32) {
    %c0_i32 = arith.constant 0 : i32
    %c0_i32_0 = arith.constant 0 : i32
    %c0_i32_1 = arith.constant 0 : i32
    return %c0_i32, %c0_i32_0 : i32, i32
  }
  func.func @transform_3(%arg0: i32) -> (i32, i32) {
    %c0_i32 = arith.constant 0 : i32
    %c0_i32_0 = arith.constant 0 : i32
    %c0_i32_1 = arith.constant 0 : i32
    return %c0_i32, %c0_i32_0 : i32, i32
  }
  func.func @transform_4(%arg0: i32) -> (i32, i32) {
    %c0_i32 = arith.constant 0 : i32
    %c0_i32_0 = arith.constant 0 : i32
    %c0_i32_1 = arith.constant 0 : i32
    return %c0_i32, %c0_i32_0 : i32, i32
  }
  func.func @transform_5(%arg0: i32) -> (i32, i32) {
    %c0_i32 = arith.constant 0 : i32
    %c0_i32_0 = arith.constant 0 : i32
    return %arg0, %c0_i32 : i32, i32
  }
  func.func @transform_6(%arg0: i32) -> (i32, i32) {
    %c0_i32 = arith.constant 0 : i32
    %c0_i32_0 = arith.constant 0 : i32
    %c0_i32_1 = arith.constant 0 : i32
    return %c0_i32, %c0_i32_0 : i32, i32
  }
  func.func @transform_7(%arg0: i32) -> (i32, i32) {
    %c0_i32 = arith.constant 0 : i32
    %c0_i32_0 = arith.constant 0 : i32
    %c0_i32_1 = arith.constant 0 : i32
    return %c0_i32, %c0_i32_0 : i32, i32
  }
  func.func @transform_8(%arg0: i32) -> (i32, i32) {
    %c0_i32 = arith.constant 0 : i32
    %c0_i32_0 = arith.constant 0 : i32
    %c0_i32_1 = arith.constant 0 : i32
    return %c0_i32, %c0_i32_0 : i32, i32
  }
  func.func @transform_9(%arg0: i32) -> (i32, i32) {
    %c0_i32 = arith.constant 0 : i32
    %c0_i32_0 = arith.constant 0 : i32
    %c0_i32_1 = arith.constant 0 : i32
    return %c0_i32, %c0_i32_0 : i32, i32
  }
}

</mosaic_0001>

<bundles_post_ra>
// kernel: tpu_custom_call.1
= control target key start
LH: loop header
LB: loop body
LE: loop exit
PB: predicated region body
PF: predicated region fallthrough
CT: control target
= control target key end

     0   :  { %s6849_s0 = inlined_call_operand.hbm [shape: f32[2,8,196], index: 0, kind: input, shape index: {}]   ;;  %s6850_s1 = inlined_call_operand.hbm [shape: f32[16,196], index: 1, kind: input, shape index: {}]   ;;  %s6851_s2 = inlined_call_operand.hbm [shape: f32[8,128], index: 2, kind: input, shape index: {}]   ;;  %s6852_s3 = inlined_call_operand.hbm [shape: f32[1,128], index: 3, kind: input, shape index: {}]   ;;  %s6853_s4 = inlined_call_operand.hbm [shape: f32[1,128], index: 4, kind: input, shape index: {}]   ;;  %s6854_s5 = inlined_call_operand.hbm [shape: bf16[2048,1024], index: 5, kind: input, shape index: {}]   ;;  %s6855_s6 = inlined_call_operand.hbm [shape: f32[1,1024], index: 6, kind: input, shape index: {}]   ;;  %s6856_s7 = inlined_call_operand.vmem [shape: bf16[1024,10], index: 7, kind: input, shape index: {}]   ;;  %s6857_s8 = inlined_call_operand.hbm [shape: f32[1,10], index: 8, kind: input, shape index: {}]   ;;  %s6858_s9 = inlined_call_operand.hbm [shape: f32[2,10], index: 9, kind: output, shape index: {}]  }
   0x1   :  { %6859 = sst [smem:[#allocation26_spill]] %s6850_s1 }
   0x2   :  { %6860 = sst [smem:[#allocation27_spill]] %s6852_s3 }
   0x3   :  { %14 = vsyncpa [#allocation5], 0 }
   0x4   :  { %15 = vsyncpa [#allocation8], 0 }
   0x5   :  { %16 = vsyncpa [#allocation11], 0 }
   0x6   :  { %17 = vsyncpa [#allocation14], 0 }
   0x7   :  { %19 = vsyncpa [#allocation14 + $0x1], 0 }
   0x8   :  { %20 = vsyncpa [#allocation17], 0 }
   0x9   :  { %21 = vsyncpa [#allocation6], 0  ;;  %s5813_s30 = smov 0   ;;  %s5815_s10 = smov 0  }
   0xa   :  { %s5817_s11 = smov 0   ;;  %s5819_s12 = smov 0  }
   0xb LB: > { %s5834_s13 = sadd.s32 4294967295, %s5747_s12   ;;  %p3642_p0 = scmp.ge.s32.totalorder %s5747_s12, 1  ;;  %s5747_s12 = sphi %s5819_s12, %s6879_s12   ;;  %s5743_s11 = sphi %s5817_s11, %s6878_s11   ;;  %s5739_s10 = sphi %s5815_s10, %s6877_s10   ;;  %s5735_s30 = sphi %s5813_s30, %s6876_s30  }
   0xc   : > { %p153_p1 = scmp.eq.s32.totalorder %s5834_s13, 0  ;;  %p247_p2 = scmp.lt.s32.totalorder %s5747_s12, 5 }
   0xd   : > { %p3643_p3 = scmp.ne.s32.totalorder %s5834_s13, 0  ;;  %s6861_s1 = sld [smem:[#allocation26_spill]] }
   0xe   : > { %p5843_p4 = pnand %p3642_p0, %p247_p2  ;;  %s5749_s18 = smov [#allocation7]  }
   0xf   : > { %s274_s19 = sshll.u32 %s5749_s18, 4  ;;  %s6863_s3 = sld [smem:[#allocation27_spill]]  ;;  %s275_s19 = int_to_ptr.vmem [resolvable:$true] %s274_s19 }
  0x10   : > { %p5323_p5 = pneg %p5843_p4  ;;  %s323_s26 = sshll.u32 %s6855_s6, 4  ;;  %s324_s26 = int_to_ptr.hbm [resolvable:$true] %s323_s26 }
  0x11   : > { %s5750_s27 = smov [#allocation10]   ;;  %s5751_s29 = smov 256  }
  0x12   : > { %p5854_p6 = pnand %p5323_p5, %p153_p1  ;;  %s301_s28 = sshll.u32 %s5750_s27, 4  ;;  %s302_s28 = int_to_ptr.vmem [resolvable:$true] %s301_s28 }
  0x13   : > { %s272_s16 = sshll.u32 %s6861_s1, 4  ;;  %s5752_s14 = smov 16   ;;  %s273_s16 = int_to_ptr.hbm [resolvable:$true] %s272_s16 }
  0x14   : > { %5329 = dma.hbm_to_vmem [thread:$0]  (!%p5854_p6), %s273_s16, 512, %s275_s19, [#allocation8], %s5751_s29, %s5751_s29, %s5752_s14  }
  0x15   : > { %s299_s22 = sshll.u32 %s6863_s3, 4  ;;  %s258_s20 = sshll.u32 %s6849_s0, 4  ;;  %s300_s22 = int_to_ptr.hbm [resolvable:$true] %s299_s22  ;;  %s259_s20 = int_to_ptr.hbm [resolvable:$true] %s258_s20 }
  0x16   : > { %5335 = dma.hbm_to_vmem [thread:$0]  (!%p5854_p6), %s300_s22, 16, %s302_s28, [#allocation11]  }
  0x17   : > { %s5753_s21 = smov [#allocation15]   ;;  %s5754_s24 = smov [#allocation4]  }
  0x18   : > { %s325_s1 = sshll.u32 %s5753_s21, 4  ;;  %s260_s25 = sshll.u32 %s5754_s24, 4  ;;  %s326_s1 = int_to_ptr.vmem [resolvable:$true] %s325_s1  ;;  %s261_s25 = int_to_ptr.vmem [resolvable:$true] %s260_s25 }
  0x19   : > { %5341 = dma.hbm_to_vmem [thread:$0]  (!%p5854_p6), %s324_s26, 128, %s326_s1, [#allocation14]  }
  0x1a   : > { %s287_s16 = sshll.u32 %s6851_s2, 4  ;;  %s311_s28 = sshll.u32 %s6853_s4, 4  ;;  %s288_s16 = int_to_ptr.hbm [resolvable:$true] %s287_s16  ;;  %s312_s28 = int_to_ptr.hbm [resolvable:$true] %s311_s28 }
  0x1b   : > { %5326 = dma.hbm_to_vmem [thread:$0]  (!%p5854_p6), %s259_s20, 512, %s261_s25, [#allocation5], %s5751_s29, %s5751_s29, %s5752_s14  }
  0x1c   : > { %s5755_s15 = smov [#allocation9]   ;;  %s5756_s3 = smov [#allocation12]  }
  0x1d   : > { %s289_s1 = sshll.u32 %s5755_s15, 4  ;;  %s313_s26 = sshll.u32 %s5756_s3, 4  ;;  %s290_s1 = int_to_ptr.vmem [resolvable:$true] %s289_s1  ;;  %s314_s26 = int_to_ptr.vmem [resolvable:$true] %s313_s26 }
  0x1e   : > { %5332 = dma.hbm_to_vmem [thread:$0]  (!%p5854_p6), %s288_s16, 128, %s290_s1, [#allocation8]  }
  0x1f   : > { %s338_s18 = sshll.u32 %s6857_s8, 4  ;;  %s5757_s20 = smov [#allocation16]   ;;  %s339_s18 = int_to_ptr.hbm [resolvable:$true] %s338_s18 }
  0x20   : > { %5338 = dma.hbm_to_vmem [thread:$0]  (!%p5854_p6), %s312_s28, 16, %s314_s26, [#allocation11]  }
  0x21   : > { %s340_s21 = sshll.u32 %s5757_s20, 4  ;;  %s5888_s24 = sadd.s32 1, %s5747_s12   ;;  %s341_s21 = int_to_ptr.vmem [resolvable:$true] %s340_s21 }
  0x22   : > { %5344 = dma.hbm_to_vmem [thread:$0]  (!%p5854_p6), %s339_s18, 16, %s341_s21, [#allocation17]  }
  0x23   : > { %s136_s25 = ssub.s32 %s5747_s12, %s5888_s24  ;;  %s139_s27 = sadd.s32 1, %s5743_s11 }
  0x24   : > { %p137_p7 = scmp.eq.s32.totalorder %s136_s25, 0  ;;  %p146_p8 = scmp.ne.s32.totalorder %s5743_s11, %s5739_s10 }
  0x25   : > { %p147_p9 = scmp.eq.s32.totalorder %s5747_s12, 0  ;;  %p152_p10 = scmp.ne.s32.totalorder %s5739_s10, %s5735_s30 }
  0x26   : > { %s5899_s16 = scalar_select %p137_p7, %s5743_s11, %s139_s27  }
  0x27   : > { %p5901_p11 = por %p147_p9, %p146_p8  ;;  %p5907_p12 = por %p153_p1, %p152_p10 }
  0x28   : > { %p5356_p13 = scmp.lt.s32.totalorder %s5747_s12, 4  ;;  %s351_s22 = sand.u32 1, %s5747_s12  }
  0x29   : > { %s353_s28 = sand.u32 1, %s5743_s11   ;;  %s4966_s1 = sshll.u32 %s5747_s12, 11 }
  0x2a   : > { %s3651_s15 = sshll.u32 %s353_s28, 11  ;;  %s361_s30 = scalar_lea.hbm %s6854_s5, %s4966_s1 }
  0x2b   : > { %s362_s29 = sshll.u32 %s361_s30, 4  ;;  %s355_s14 = scalar_lea.vmem [#allocation13], %s3651_s15  ;;  %s363_s29 = int_to_ptr.hbm [resolvable:$true] %s362_s29 }
  0x2c   : > { %s364_s18 = sshll.u32 %s355_s14, 4  ;;  %p5920_p0 = pnand %p5356_p13, %p5901_p11  ;;  %s365_s18 = int_to_ptr.vmem [resolvable:$true] %s364_s18 }
  0x2d   : > { %s352_s21 = scalar_lea.sflag [#allocation14], %s351_s22  ;;  %s5631_s25 = sshra.s32 %s363_s29, 4  ;;  %s5632_s25 = int_to_ptr.hbm [resolvable:$true] %s5631_s25 }
  0x2e   : > { %s5633_s27 = scalar_lea.hbm %s5632_s25, 2048  ;;  %p5635_p5 = pneg %p5920_p0 }
  0x2f   : > { %p5634_p2 = scmp.ne.s32.totalorder %s5632_s25, %s5633_s27  ;;  %s5638_s15 = scalar_lea.hbm %s6854_s5, 8192 }
  0x30   : > { %p5639_p8 = scmp.lt.s32.totalorder %s5632_s25, %s6854_s5  ;;  %p5640_p9 = scmp.lt.s32.totalorder %s5638_s15, %s5633_s27 }
  0x31   : > { %p5636_p6 = pnand %p5635_p5, %p5634_p2 }
  0x32   : > { %p5641_p10 = por %p5640_p9, %p5639_p8 }
  0x33   : > { %p5637_p7 = pneg %p5636_p6 }
  0x35   : > { %p5642_p11 = pnand %p5641_p10, %p5637_p7 }
  0x37   : > { %5645 = shalt.err (!%p5642_p11)
}
  0x38   : > { %s5758_s22 = smov 512   ;;  %s5759_s3 = smov 32  }
  0x39   : > { %5348 = dma.hbm_to_vmem [thread:$0]  (!%p5920_p0), %s363_s29, 32768, %s365_s18, %s352_s21, %s5758_s22, %s5758_s22, %s5759_s3  }
  0x3a   : > { %376 = sbr.rel (%p5843_p4) target bundleno = 1185 (0x4a1), region = 56 }
  0x3f   : > { %5706 = dma.done.wait (%p153_p1), [#allocation5], 512  }
  0x40   : > { %5708 = vsyncadd (%p153_p1), [#allocation5], 4294966784 }
  0x41   : > { %5710 = dma.done.wait (%p153_p1), [#allocation8], 640  }
  0x42   : > { %5712 = vsyncadd (%p153_p1), [#allocation8], 4294966656 }
  0x43   : > { %5714 = dma.done.wait (%p153_p1), [#allocation11], 32  }
  0x44   : > { %5716 = vsyncadd (%p153_p1), [#allocation11], 4294967264  ;;  %s403_s17 = sand.u32 1, %s5834_s13   ;;  %s405_s26 = sand.u32 1, %s5739_s10  }
  0x45   : > { %s3661_s30 = sshll.u32 %s405_s26, 11  ;;  %s404_s29 = scalar_lea.sflag [#allocation14], %s403_s17 }
  0x46   : > { %s5950_s14 = scalar_lea.vmem [#allocation13], %s3661_s30 }
  0x47   : > { %5718 = dma.done.wait (%p5907_p12), %s404_s29, 32768  }
  0x48   : > { %5720 = vsyncadd (%p5907_p12), %s404_s29, 4294934528 }
  0x49   : > { %5722 = dma.done.wait (%p153_p1), [#allocation14], 128  }
  0x4a   : > { %5724 = vsyncadd (%p153_p1), [#allocation14], 4294967168 }
  0x4b   : > { %5726 = dma.done.wait (%p153_p1), [#allocation17], 16  }
  0x4c   : > { %5728 = vsyncadd (%p153_p1), [#allocation17], 4294967280  ;;  %452 = sbr.rel (%p3643_p3) target bundleno = 536 (0x218), region = 92 }
  0x51   : > { %v455_v0 = vld [vmem:[#allocation4] sm:$0xff]  ;;  %v456_v1 = vld [vmem:[#allocation4 + $0x8] sm:$0xff]  ;;  %vm461_vm0 = vcmask 556032   ;;  %v459_v2 = vld [vmem:[#allocation7 + $0x10] sm:$0xff]  ;;  %v5760_v3 = vmov 0.0   ;;  %vm518_vm1 = vcmask 64512  }
  0x52   : > { %5287 = vmatpush.xpose.msra.mxu1 %v455_v0  ;;  %453 = vst [vmem:[#allocation3] sm:$0xff] %v5760_v3  ;;  %486 = vmatpush.xpose.msra.mxu0 %v455_v0  ;;  %v457_v4 = vld [vmem:[#allocation7] sm:$0xff]  ;;  %v458_v5 = vld [vmem:[#allocation7 + $0x8] sm:$0xff]  ;;  %v460_v6 = vld [vmem:[#allocation7 + $0x18] sm:$0xff]  ;;  %v5761_v18 = vmov 1935823168  }
  0x53   : > { %454 = vst [vmem:[#allocation3 + $0x8] sm:$0xff] %v5760_v3  ;;  %v517_v7 = vld [vmem:[#allocation9] sm:$0xff]  ;;  %v649_v8 = vld [vmem:[#allocation4 + $0x10] sm:$0xff]  ;;  %v650_v9 = vld [vmem:[#allocation4 + $0x18] sm:$0xff]  ;;  %v563_v19 = vunpack.c.l.s4 %v5761_v18  ;;  %vm590_vm2 = vcmask 1040384   ;;  %vm601_vm4 = vcmask 1041409  }
  0x54   : > { %540 = vmatpush.msra.mxu2 %v517_v7  ;;  %5288 = vmatpush.msra.mxu3 %v517_v7  ;;  %v5412_v16 = vld [vmem:[#allocation10] ss:$0 sm:$0xff]  ;;  %v5413_v17 = vld [vmem:[#allocation12] ss:$0 sm:$0xff]  ;;  %vm622_vm3 = vsmask.f32 256 }
  0x55   : > { %490 = vmatmul.f32.vlgmr.msra.gmra.mxu1 %v459_v2  ;;  %487 = vmatmul.f32.vlgmr.msra.gmra.mxu0 %v457_v4  ;;  %v5974_v23 = vunpack.c.0.s8 %v563_v19  ;;  %vm625_vm5 = vsmask.f32 1280  ;;  %vm5980_vm6 = vmand %vm590_vm2, %vm622_vm3  ;;  %vm594_vm8 = vcmask 1042434   ;;  %vm629_vm9 = vsmask.f32 2304 }
  0x56   : > { %3665 = vmatpush.xpose.msk.msrb.mxu1 %vm461_vm0, %v456_v1  ;;  %732 = vmatpush.msrb.mxu0 %v517_v7  ;;  %vm5985_vm7 = vmand %vm601_vm4, %vm625_vm5  ;;  %vm633_vm11 = vsmask.f32 3328  ;;  %vm603_vm13 = vcmask 1043459   ;;  %vm598_vm15 = vcmask 1041408   ;;  %v636_v55 = vld [vmem:[#allocation2] sm:$0xf] }
  0x57   : > { %679 = vmatpush.xpose.msrb.mxu3 %v649_v8  ;;  %3672 = vmatpush.xpose.msk.msrb.mxu2 %vm461_vm0, %v650_v9  ;;  %vm627_vm10 = vmor %vm5985_vm7, %vm5980_vm6  ;;  %v639_v59 = vld [vmem:[#allocation2 + $0x4] sm:$0xf]  ;;  %v642_v60 = vld [vmem:[#allocation2 + $0x8] sm:$0xf]  ;;  %vm807_vm5 = vsmask.f32 7938 }
  0x58   : > { %vm630_vm12 = vmand %vm594_vm8, %vm629_vm9  ;;  %v645_v1 = vld [vmem:[#allocation2 + $0xc] sm:$0xf]  ;;  %v5415_v7 = vld [vmem:[#allocation12] ss:$0 sm:$0xff]  ;;  %vm809_vm6 = vsmask.f32 7942 }
  0x59   : > { %vm631_vm14 = vmor %vm630_vm12, %vm627_vm10  ;;  %vm812_vm10 = vsmask.f32 7946  ;;  %vm815_vm12 = vsmask.f32 7950 }
  0x5a   : > { %vm634_vm3 = vmand %vm603_vm13, %vm633_vm11 }
  0x5b   : > { %vm808_vm7 = vmand %vm590_vm2, %vm807_vm5 }
  0x5c   : > { %vm810_vm9 = vmand %vm601_vm4, %vm809_vm6 }
  0x5d   : > { %3666 = vmatmul.msk.f32.vlgmr.msrb.gmra.mxu1 %vm461_vm0, %v458_v5  ;;  %vm811_vm11 = vmor %vm810_vm9, %vm808_vm7 }
  0x65   : > { %3667 = vmatmul.msk.f32.gmra.mxu1 %vm461_vm0, %v460_v6 }
  0xd2   : > { %v491_v10 = vpop.f32.mrf.mxu1  ;;  %v488_v11 = vpop.f32.mrf.mxu0 }
  0xda   : > { %v511_v12 = vpop.f32.mrf.mxu1 }
  0xdb   : > { %v512_v13 = vadd.f32 %v511_v12, %v488_v11 }
  0xdd   : > { %3668 = vmatmul.msk.f32.vlgmr.msra.gmra.mxu2 %vm518_vm1, %v512_v13 }
  0xe2   : > { %v514_v14 = vpop.f32.mrf.mxu1 }
  0xe3   : > { %v515_v15 = vadd.f32 %v514_v14, %v491_v10 }
  0xe5   : > { %3669 = vmatmul.msk.f32.vlgmr.msra.gmra.mxu3 %vm518_vm1, %v515_v15  ;;  %3673 = vmatmul.msk.f32.vlgmr.msrb.gmra.mxu2 %vm461_vm0, %v458_v5 }
  0xed   : > { %680 = vmatmul.f32.vlgmr.msrb.gmra.mxu3 %v457_v4  ;;  %3674 = vmatmul.msk.f32.gmra.mxu2 %vm461_vm0, %v460_v6  ;;  %vm605_vm0 = vcmask 1042433   ;;  %v5414_v6 = vld [vmem:[#allocation10] ss:$0 sm:$0xff] }
  0xf5   : > { %683 = vmatmul.f32.gmra.mxu3 %v459_v2 }
 0x160   : > { %v542_v20 = vpop.f32.mrf.mxu2 }
 0x161   : > { %v552_v21 = vmul.f32 %v5412_v16, %v542_v20 }
 0x163   : > { %v558_v22 = vadd.f32 %v5413_v17, %v552_v21 }
 0x165   : > { %v560_v24 = vmax.f32 %v558_v22, 0.0 }
 0x167   : > { %v565_v25 = vperm.slane %v560_v24, %v5974_v23 }
 0x168   : > { %v545_v26 = vpop.f32.mrf.mxu3  ;;  %v704_v29 = vpop.f32.mrf.mxu2 }
 0x169   : > { %572 = vst [vmem:[#allocation1] ss:$4 sm:$0xff] %v565_v25  ;;  %v553_v27 = vmul.f32 %v5412_v16, %v545_v26 }
 0x16b   : > { %v559_v28 = vadd.f32 %v5413_v17, %v553_v27 }
 0x16d   : > { %v561_v30 = vmax.f32 %v559_v28, 0.0 }
 0x16f   : > { %v569_v31 = vperm.slane %v561_v30, %v5974_v23 }
 0x170   : > { %v681_v32 = vpop.f32.mrf.mxu3  ;;  %v707_v36 = vpop.f32.mrf.mxu2 }
 0x171   : > { %574 = vst [vmem:[#allocation1 + $0x1] ss:$4 sm:$0xff] %v569_v31  ;;  %v705_v33 = vadd.f32 %v704_v29, %v681_v32 }
 0x173   : > { %3675 = vmatmul.msk.f32.vlgmr.msrb.gmra.mxu0 %vm518_vm1, %v705_v33 }
 0x178   : > { %v684_v37 = vpop.f32.mrf.mxu3  ;;  %v575_v38 = vld.sshfl [vmem:[#allocation1] sm:$0xff pattern:$0x73625140]  ;;  %v576_v39 = vld.sshfl [vmem:[#allocation1 + $0x8] sm:$0xff pattern:$0x73625140] }
 0x179   : > { %v708_v40 = vadd.f32 %v707_v36, %v684_v37  ;;  %v577_v41 = vld.sshfl [vmem:[#allocation1 + $0x10] sm:$0xff pattern:$0x73625140]  ;;  %v578_v42 = vld.sshfl [vmem:[#allocation1 + $0x18] sm:$0xff pattern:$0x73625140]  ;;  %v583_v43 = vpack.c.bf16 %v576_v39, %v575_v38 }
 0x17a   : > { %v584_v44 = vpack.c.bf16 %v578_v42, %v577_v41 }
 0x17b   : > { %3676 = vmatmul.msk.f32.gmra.mxu0 %vm518_vm1, %v708_v40  ;;  %v587_v45 = vrot.slane %v583_v43, 3  ;;  %vm6003_vm1 = vmor %vm634_vm3, %vm631_vm14 }
 0x17c   : > { %v588_v46 = vrot.slane %v584_v44, 6  ;;  %v589_v47 = vrot.slane %v584_v44, 1  ;;  %vm813_vm14 = vmand %vm594_vm8, %vm812_vm10 }
 0x17d   : > { %v593_v48 = vsel %vm590_vm2, %v583_v43, %v587_v45  ;;  %v602_v49 = vsel %vm601_vm4, %v583_v43, %v587_v45  ;;  %vm814_vm3 = vmor %vm813_vm14, %vm811_vm11 }
 0x17e   : > { %v597_v50 = vsel %vm594_vm8, %v588_v46, %v589_v47  ;;  %v604_v51 = vsel %vm603_vm13, %v588_v46, %v589_v47 }
 0x17f   : > { %v599_v52 = vsel %vm598_vm15, %v593_v48, %v597_v50  ;;  %v606_v53 = vsel %vm605_vm0, %v602_v49, %v604_v51 }
 0x180   : > { %v608_v56 = vrot.slane %v606_v53, 1  ;;  %v610_v57 = vunpack.i.h.s16 %v599_v52  ;;  %v3670_v58 = vpack.i.b16 %v599_v52, %v599_v52 }
 0x182   : > { %v612_v61 = vunpack.i.h.s16 %v608_v56  ;;  %v614_v62 = vpack.i.b16 %v610_v57, %v610_v57  ;;  %v3671_v63 = vpack.i.b16 %v608_v56, %v608_v56  ;;  %v637_v0 = vsel %vm6003_vm1, %v3670_v58, %v636_v55 }
 0x183   : > { %638 = vst [vmem:[#allocation2] sm:$0xf] %v637_v0 }
 0x184   : > { %v616_v2 = vpack.i.b16 %v612_v61, %v612_v61  ;;  %v640_v3 = vsel %vm6003_vm1, %v614_v62, %v639_v59  ;;  %v643_v4 = vsel %vm6003_vm1, %v3671_v63, %v642_v60 }
 0x185   : > { %641 = vst [vmem:[#allocation2 + $0x4] sm:$0xf] %v640_v3 }
 0x186   : > { %644 = vst [vmem:[#allocation2 + $0x8] sm:$0xf] %v643_v4  ;;  %v646_v5 = vsel %vm6003_vm1, %v616_v2, %v645_v1  ;;  %vm816_vm1 = vmand %vm603_vm13, %vm815_vm12 }
 0x187   : > { %647 = vst [vmem:[#allocation2 + $0xc] sm:$0xf] %v646_v5  ;;  %vm6025_vm5 = vmor %vm816_vm1, %vm814_vm3 }
 0x18a   : > { %v818_v37 = vld [vmem:[#allocation2] sm:$0xf] }
 0x18c   : > { %v821_v42 = vld [vmem:[#allocation2 + $0x4] sm:$0xf] }
 0x18d   : > { %v824_v43 = vld [vmem:[#allocation2 + $0x8] sm:$0xf] }
 0x18e   : > { %v827_v47 = vld [vmem:[#allocation2 + $0xc] sm:$0xf] }
 0x1f0   : > { %v734_v8 = vpop.f32.mrf.mxu0 }
 0x1f1   : > { %v744_v9 = vmul.f32 %v5414_v6, %v734_v8 }
 0x1f3   : > { %v750_v10 = vadd.f32 %v5415_v7, %v744_v9 }
 0x1f5   : > { %v752_v11 = vmax.f32 %v750_v10, 0.0 }
 0x1f7   : > { %v757_v12 = vperm.slane %v752_v11, %v5974_v23 }
 0x1f8   : > { %v737_v13 = vpop.f32.mrf.mxu0 }
 0x1f9   : > { %764 = vst [vmem:[#allocation1] ss:$4 sm:$0xff] %v757_v12  ;;  %v745_v14 = vmul.f32 %v5414_v6, %v737_v13 }
 0x1fb   : > { %v751_v15 = vadd.f32 %v5415_v7, %v745_v14 }
 0x1fd   : > { %v753_v16 = vmax.f32 %v751_v15, 0.0 }
 0x1ff   : > { %v761_v17 = vperm.slane %v753_v16, %v5974_v23 }
 0x201   : > { %766 = vst [vmem:[#allocation1 + $0x1] ss:$4 sm:$0xff] %v761_v17 }
 0x208   : > { %v767_v18 = vld.sshfl [vmem:[#allocation1] sm:$0xff pattern:$0x73625140]  ;;  %v768_v19 = vld.sshfl [vmem:[#allocation1 + $0x8] sm:$0xff pattern:$0x73625140] }
 0x209   : > { %v769_v20 = vld.sshfl [vmem:[#allocation1 + $0x10] sm:$0xff pattern:$0x73625140]  ;;  %v770_v21 = vld.sshfl [vmem:[#allocation1 + $0x18] sm:$0xff pattern:$0x73625140]  ;;  %v775_v22 = vpack.c.bf16 %v768_v19, %v767_v18 }
 0x20a   : > { %v776_v24 = vpack.c.bf16 %v770_v21, %v769_v20 }
 0x20b   : > { %v779_v23 = vrot.slane %v775_v22, 3 }
 0x20c   : > { %v780_v25 = vrot.slane %v776_v24, 6  ;;  %v781_v26 = vrot.slane %v776_v24, 1 }
 0x20d   : > { %v784_v27 = vsel %vm590_vm2, %v775_v22, %v779_v23  ;;  %v790_v28 = vsel %vm601_vm4, %v775_v22, %v779_v23 }
 0x20e   : > { %v787_v29 = vsel %vm594_vm8, %v780_v25, %v781_v26  ;;  %v791_v30 = vsel %vm603_vm13, %v780_v25, %v781_v26 }
 0x20f   : > { %v788_v32 = vsel %vm598_vm15, %v784_v27, %v787_v29  ;;  %v792_v33 = vsel %vm605_vm0, %v790_v28, %v791_v30 }
 0x210   : > { %v794_v34 = vrot.slane %v792_v33, 1  ;;  %v796_v35 = vunpack.i.h.s16 %v788_v32  ;;  %v3677_v36 = vpack.i.b16 %v788_v32, %v788_v32 }
 0x212   : > { %v798_v38 = vunpack.i.h.s16 %v794_v34  ;;  %v800_v39 = vpack.i.b16 %v796_v35, %v796_v35  ;;  %v3678_v40 = vpack.i.b16 %v794_v34, %v794_v34  ;;  %v819_v41 = vsel %vm6025_vm5, %v3677_v36, %v818_v37 }
 0x213   : > { %820 = vst [vmem:[#allocation2] sm:$0xf] %v819_v41 }
 0x214   : > { %v802_v44 = vpack.i.b16 %v798_v38, %v798_v38  ;;  %v822_v45 = vsel %vm6025_vm5, %v800_v39, %v821_v42  ;;  %v825_v46 = vsel %vm6025_vm5, %v3678_v40, %v824_v43 }
 0x215   : > { %823 = vst [vmem:[#allocation2 + $0x4] sm:$0xf] %v822_v45 }
 0x216   : > { %826 = vst [vmem:[#allocation2 + $0x8] sm:$0xf] %v825_v46  ;;  %v828_v48 = vsel %vm6025_vm5, %v802_v44, %v827_v47 }
 0x217   : > { %829 = vst [vmem:[#allocation2 + $0xc] sm:$0xf] %v828_v48 }
 0x218 PF: > { %v3906_v49 = vld [vmem:[%s5950_s14 + $0x1c0] sm:$0xf]  ;;  %s3679_s23 = sshll.u32 %s5834_s13, 2  ;;  %vm2811_vm2 = vcmask 1041408   ;;  %vm2813_vm4 = vcmask 1045508   ;;  %vm2815_vm8 = vcmask 1043456  }
 0x219   : > { %v5027_v50 = vld [vmem:[%s5950_s14 + $0x1dc] sm:$0xf0]  ;;  %s833_s18 = scalar_lea.vmem [#allocation2], %s3679_s23  ;;  %p4704_p1 = scmp.ne.s32.totalorder %s5834_s13, 3 }
 0x21a   : > { %v4162_v51 = vld [vmem:[%s5950_s14 + $0x3c0] sm:$0xf]  ;;  %v3907_v52 = vor.u32 %v5027_v50, %v3906_v49 }
 0x21b   : > { %v5091_v53 = vld [vmem:[%s5950_s14 + $0x3dc] sm:$0xf0] }
 0x21c   : > { %v4418_v54 = vld [vmem:[%s5950_s14 + $0x5c0] sm:$0xf]  ;;  %v4163_v56 = vor.u32 %v5091_v53, %v4162_v51  ;;  %2381 = vmatpush.bf16.msra.mxu0 %v3907_v52 }
 0x21d   : > { %v5155_v55 = vld [vmem:[%s5950_s14 + $0x5dc] sm:$0xf0] }
 0x21e   : > { %v4419_v57 = vor.u32 %v5155_v55, %v4418_v54  ;;  %v4674_v58 = vld [vmem:[%s5950_s14 + $0x7c0] sm:$0xf]  ;;  %2394 = vmatpush.bf16.msra.mxu1 %v4163_v56 }
 0x21f   : > { %v5219_v59 = vld [vmem:[%s5950_s14 + $0x7dc] sm:$0xf0] }
 0x220   : > { %v3874_v60 = vld [vmem:[%s5950_s14 + $0x180] sm:$0xf]  ;;  %v4675_v61 = vor.u32 %v5219_v59, %v4674_v58  ;;  %2407 = vmatpush.bf16.msra.mxu2 %v4419_v57 }
 0x221   : > { %v5019_v62 = vld [vmem:[%s5950_s14 + $0x19c] sm:$0xf0] }
 0x222   : > { %v4130_v63 = vld [vmem:[%s5950_s14 + $0x380] sm:$0xf]  ;;  %v3875_v1 = vor.u32 %v5019_v62, %v3874_v60  ;;  %2420 = vmatpush.bf16.msra.mxu3 %v4675_v61 }
 0x223   : > { %v5083_v0 = vld [vmem:[%s5950_s14 + $0x39c] sm:$0xf0] }
 0x224   : > { %v4131_v2 = vor.u32 %v5083_v0, %v4130_v63  ;;  %v4386_v3 = vld [vmem:[%s5950_s14 + $0x580] sm:$0xf]  ;;  %2382 = vmatpush.bf16.msra.mxu0 %v3875_v1 }
 0x225   : > { %v5147_v4 = vld [vmem:[%s5950_s14 + $0x59c] sm:$0xf0] }
 0x226   : > { %v4642_v5 = vld [vmem:[%s5950_s14 + $0x780] sm:$0xf]  ;;  %v4387_v6 = vor.u32 %v5147_v4, %v4386_v3  ;;  %2395 = vmatpush.bf16.msra.mxu1 %v4131_v2 }
 0x227   : > { %v5211_v7 = vld [vmem:[%s5950_s14 + $0x79c] sm:$0xf0] }
 0x228   : > { %v3842_v8 = vld [vmem:[%s5950_s14 + $0x140] sm:$0xf]  ;;  %v4643_v10 = vor.u32 %v5211_v7, %v4642_v5  ;;  %2408 = vmatpush.bf16.msra.mxu2 %v4387_v6 }
 0x229   : > { %v5011_v9 = vld [vmem:[%s5950_s14 + $0x15c] sm:$0xf0] }
 0x22a   : > { %v4098_v11 = vld [vmem:[%s5950_s14 + $0x340] sm:$0xf]  ;;  %v3843_v14 = vor.u32 %v5011_v9, %v3842_v8  ;;  %2421 = vmatpush.bf16.msra.mxu3 %v4643_v10 }
 0x22b   : > { %v5075_v12 = vld [vmem:[%s5950_s14 + $0x35c] sm:$0xf0] }
 0x22c   : > { %v4354_v13 = vld [vmem:[%s5950_s14 + $0x540] sm:$0xf]  ;;  %v4099_v18 = vor.u32 %v5075_v12, %v4098_v11  ;;  %2383 = vmatpush.bf16.msra.mxu0 %v3843_v14  ;;  %v3908_v14 = vld [vmem:[%s5950_s14 + $0x1e0] sm:$0xf0] }
 0x22d   : > { %v5139_v15 = vld [vmem:[%s5950_s14 + $0x55c] sm:$0xf0] }
 0x22e   : > { %v4610_v16 = vld [vmem:[%s5950_s14 + $0x740] sm:$0xf]  ;;  %v4355_v19 = vor.u32 %v5139_v15, %v4354_v13  ;;  %2396 = vmatpush.bf16.msra.mxu1 %v4099_v18  ;;  %v5023_v13 = vld [vmem:[%s5950_s14 + $0x1c4] sm:$0xf] }
 0x22f   : > { %v5203_v17 = vld [vmem:[%s5950_s14 + $0x75c] sm:$0xf0]  ;;  %v5087_v15 = vld [vmem:[%s5950_s14 + $0x3c4] sm:$0xf] }
 0x230   : > { %v3810_v20 = vld [vmem:[%s5950_s14 + $0x100] sm:$0xf]  ;;  %v4611_v24 = vor.u32 %v5203_v17, %v4610_v16  ;;  %2409 = vmatpush.bf16.msra.mxu2 %v4355_v19  ;;  %v4164_v17 = vld [vmem:[%s5950_s14 + $0x3e0] sm:$0xf0] }
 0x231   : > { %v5003_v21 = vld [vmem:[%s5950_s14 + $0x11c] sm:$0xf0]  ;;  %v5151_v18 = vld [vmem:[%s5950_s14 + $0x5c4] sm:$0xf] }
 0x232   : > { %v4066_v22 = vld [vmem:[%s5950_s14 + $0x300] sm:$0xf]  ;;  %v3811_v29 = vor.u32 %v5003_v21, %v3810_v20  ;;  %2422 = vmatpush.bf16.msra.mxu3 %v4611_v24  ;;  %v4420_v19 = vld [vmem:[%s5950_s14 + $0x5e0] sm:$0xf0] }
 0x233   : > { %v5067_v23 = vld [vmem:[%s5950_s14 + $0x31c] sm:$0xf0]  ;;  %v4676_v24 = vld [vmem:[%s5950_s14 + $0x7e0] sm:$0xf0] }
 0x234   : > { %v4322_v25 = vld [vmem:[%s5950_s14 + $0x500] sm:$0xf]  ;;  %v4067_v30 = vor.u32 %v5067_v23, %v4066_v22  ;;  %2384 = vmatpush.bf16.msra.mxu0 %v3811_v29  ;;  %v5215_v22 = vld [vmem:[%s5950_s14 + $0x7c4] sm:$0xf] }
 0x235   : > { %v5131_v26 = vld [vmem:[%s5950_s14 + $0x51c] sm:$0xf0]  ;;  %v3876_v29 = vld [vmem:[%s5950_s14 + $0x1a0] sm:$0xf0] }
 0x236   : > { %v4578_v27 = vld [vmem:[%s5950_s14 + $0x700] sm:$0xf]  ;;  %v4323_v31 = vor.u32 %v5131_v26, %v4322_v25  ;;  %2397 = vmatpush.bf16.msra.mxu1 %v4067_v30  ;;  %v3911_v25 = vor.u32 %v5023_v13, %v3908_v14  ;;  %v4167_v26 = vor.u32 %v5087_v15, %v4164_v17  ;;  %v5079_v30 = vld [vmem:[%s5950_s14 + $0x384] sm:$0xf] }
 0x237   : > { %v5195_v28 = vld [vmem:[%s5950_s14 + $0x71c] sm:$0xf0]  ;;  %v4548_v13 = vld [vmem:[%s5950_s14 + $0x6e0] sm:$0xf0] }
 0x238   : > { %v3778_v32 = vld [vmem:[%s5950_s14 + $0xc0] sm:$0xf]  ;;  %v4579_v35 = vor.u32 %v5195_v28, %v4578_v27  ;;  %2410 = vmatpush.bf16.msra.mxu2 %v4323_v31  ;;  %v4423_v27 = vor.u32 %v5151_v18, %v4420_v19  ;;  %v5015_v28 = vld [vmem:[%s5950_s14 + $0x184] sm:$0xf]  ;;  %v4679_v31 = vor.u32 %v5215_v22, %v4676_v24 }
 0x239   : > { %v4995_v33 = vld [vmem:[%s5950_s14 + $0xdc] sm:$0xf0]  ;;  %v4983_v17 = vld [vmem:[%s5950_s14 + $0x84] sm:$0xf] }
 0x23a   : > { %v4034_v34 = vld [vmem:[%s5950_s14 + $0x2c0] sm:$0xf]  ;;  %v3779_v41 = vor.u32 %v4995_v33, %v3778_v32  ;;  %2423 = vmatpush.bf16.msra.mxu3 %v4579_v35  ;;  %v4132_v32 = vld [vmem:[%s5950_s14 + $0x3a0] sm:$0xf0] }
 0x23b   : > { %v5059_v36 = vld [vmem:[%s5950_s14 + $0x2dc] sm:$0xf0]  ;;  %v5143_v33 = vld [vmem:[%s5950_s14 + $0x584] sm:$0xf] }
 0x23c   : > { %v4290_v37 = vld [vmem:[%s5950_s14 + $0x4c0] sm:$0xf]  ;;  %v4035_v42 = vor.u32 %v5059_v36, %v4034_v34  ;;  %2385 = vmatpush.bf16.msra.mxu0 %v3779_v41  ;;  %v4388_v34 = vld [vmem:[%s5950_s14 + $0x5a0] sm:$0xf0] }
 0x23d   : > { %v5123_v38 = vld [vmem:[%s5950_s14 + $0x4dc] sm:$0xf0]  ;;  %v5207_v35 = vld [vmem:[%s5950_s14 + $0x784] sm:$0xf]  ;;  %v4391_v41 = vor.u32 %v5143_v33, %v4388_v34 }
 0x23e   : > { %v4546_v39 = vld [vmem:[%s5950_s14 + $0x6c0] sm:$0xf]  ;;  %v4291_v43 = vor.u32 %v5123_v38, %v4290_v37  ;;  %2398 = vmatpush.bf16.msra.mxu1 %v4035_v42  ;;  %v4644_v36 = vld [vmem:[%s5950_s14 + $0x7a0] sm:$0xf0]  ;;  %v3879_v37 = vor.u32 %v5015_v28, %v3876_v29 }
 0x23f   : > { %v5187_v40 = vld [vmem:[%s5950_s14 + $0x6dc] sm:$0xf0]  ;;  %v5007_v38 = vld [vmem:[%s5950_s14 + $0x144] sm:$0xf] }
 0x240   : > { %v3746_v44 = vld [vmem:[%s5950_s14 + $0x80] sm:$0xf]  ;;  %v4547_v47 = vor.u32 %v5187_v40, %v4546_v39  ;;  %2411 = vmatpush.bf16.msra.mxu2 %v4291_v43  ;;  %v3844_v39 = vld [vmem:[%s5950_s14 + $0x160] sm:$0xf0]  ;;  %v4135_v40 = vor.u32 %v5079_v30, %v4132_v32 }
 0x241   : > { %v4987_v45 = vld [vmem:[%s5950_s14 + $0x9c] sm:$0xf0]  ;;  %v5071_v42 = vld [vmem:[%s5950_s14 + $0x344] sm:$0xf] }
 0x242   : > { %v4002_v46 = vld [vmem:[%s5950_s14 + $0x280] sm:$0xf]  ;;  %v3747_v53 = vor.u32 %v4987_v45, %v3746_v44  ;;  %2424 = vmatpush.bf16.msra.mxu3 %v4547_v47  ;;  %v4100_v43 = vld [vmem:[%s5950_s14 + $0x360] sm:$0xf0]  ;;  %v834_v44 = vld [vmem:[%s833_s18] sm:$0xf]  ;;  %v4647_v45 = vor.u32 %v5207_v35, %v4644_v36 }
 0x243   : > { %v5051_v48 = vld [vmem:[%s5950_s14 + $0x29c] sm:$0xf0]  ;;  %v4356_v47 = vld [vmem:[%s5950_s14 + $0x560] sm:$0xf0]  ;;  %1092 = vst [vmem:[#allocation1] ss:$9 sm:$0xff] %v834_v44 }
 0x244   : > { %v4258_v49 = vld [vmem:[%s5950_s14 + $0x480] sm:$0xf]  ;;  %v4003_v54 = vor.u32 %v5051_v48, %v4002_v46  ;;  %2386 = vmatpush.bf16.msra.mxu0 %v3747_v53  ;;  %v5135_v46 = vld [vmem:[%s5950_s14 + $0x544] sm:$0xf] }
 0x245   : > { %v5115_v50 = vld [vmem:[%s5950_s14 + $0x49c] sm:$0xf0]  ;;  %v5199_v48 = vld [vmem:[%s5950_s14 + $0x744] sm:$0xf] }
 0x246   : > { %v4514_v51 = vld [vmem:[%s5950_s14 + $0x680] sm:$0xf]  ;;  %v4259_v55 = vor.u32 %v5115_v50, %v4258_v49  ;;  %2399 = vmatpush.bf16.msra.mxu1 %v4003_v54  ;;  %v4612_v49 = vld [vmem:[%s5950_s14 + $0x760] sm:$0xf0]  ;;  %v3847_v50 = vor.u32 %v5007_v38, %v3844_v39 }
 0x247   : > { %v5179_v52 = vld [vmem:[%s5950_s14 + $0x69c] sm:$0xf0]  ;;  %v4999_v53 = vld [vmem:[%s5950_s14 + $0x104] sm:$0xf] }
 0x248   : > { %v3714_v56 = vld [vmem:[%s5950_s14 + $0x40] sm:$0xf]  ;;  %v4515_v59 = vor.u32 %v5179_v52, %v4514_v51  ;;  %2412 = vmatpush.bf16.msra.mxu2 %v4259_v55  ;;  %v4103_v51 = vor.u32 %v5071_v42, %v4100_v43  ;;  %v4359_v52 = vor.u32 %v5135_v46, %v4356_v47  ;;  %v3812_v54 = vld [vmem:[%s5950_s14 + $0x120] sm:$0xf0] }
 0x249   : > { %v4979_v57 = vld [vmem:[%s5950_s14 + $0x5c] sm:$0xf0]  ;;  %v5063_v55 = vld [vmem:[%s5950_s14 + $0x304] sm:$0xf] }
 0x24a   : > { %v3970_v58 = vld [vmem:[%s5950_s14 + $0x240] sm:$0xf]  ;;  %v3715_v1 = vor.u32 %v4979_v57, %v3714_v56  ;;  %2425 = vmatpush.bf16.msra.mxu3 %v4515_v59  ;;  %v4615_v56 = vor.u32 %v5199_v48, %v4612_v49  ;;  %v4068_v57 = vld [vmem:[%s5950_s14 + $0x320] sm:$0xf0] }
 0x24b   : > { %v5043_v60 = vld [vmem:[%s5950_s14 + $0x25c] sm:$0xf0]  ;;  %v4324_v59 = vld [vmem:[%s5950_s14 + $0x520] sm:$0xf0] }
 0x24c   : > { %v4226_v61 = vld [vmem:[%s5950_s14 + $0x440] sm:$0xf]  ;;  %v3971_v4 = vor.u32 %v5043_v60, %v3970_v58  ;;  %2387 = vmatpush.bf16.msra.mxu0 %v3715_v1  ;;  %v5127_v58 = vld [vmem:[%s5950_s14 + $0x504] sm:$0xf] }
 0x24d   : > { %v5107_v62 = vld [vmem:[%s5950_s14 + $0x45c] sm:$0xf0]  ;;  %v5191_v60 = vld [vmem:[%s5950_s14 + $0x704] sm:$0xf] }
 0x24e   : > { %v4482_v63 = vld [vmem:[%s5950_s14 + $0x640] sm:$0xf]  ;;  %v4227_v5 = vor.u32 %v5107_v62, %v4226_v61  ;;  %2400 = vmatpush.bf16.msra.mxu1 %v3971_v4  ;;  %v4580_v61 = vld [vmem:[%s5950_s14 + $0x720] sm:$0xf0]  ;;  %v4327_v4 = vor.u32 %v5127_v58, %v4324_v59  ;;  %v4682_v59 = vld [vmem:[%s5950_s14 + $0x7c8] sm:$0xf] }
 0x24f   : > { %v5171_v0 = vld [vmem:[%s5950_s14 + $0x65c] sm:$0xf0]  ;;  %v4991_v62 = vld [vmem:[%s5950_s14 + $0xc4] sm:$0xf] }
 0x250   : > { %v3682_v2 = vld [vmem:[%s5950_s14] sm:$0xf]  ;;  %v4483_v9 = vor.u32 %v5171_v0, %v4482_v63  ;;  %2413 = vmatpush.bf16.msra.mxu2 %v4227_v5  ;;  %v3815_v63 = vor.u32 %v4999_v53, %v3812_v54  ;;  %v3780_v0 = vld [vmem:[%s5950_s14 + $0xe0] sm:$0xf0]  ;;  %v5092_v54 = vld [vmem:[%s5950_s14 + $0x3e4] sm:$0xf0] }
 0x251   : > { %v4971_v3 = vld [vmem:[%s5950_s14 + $0x1c] sm:$0xf0]  ;;  %v5055_v1 = vld [vmem:[%s5950_s14 + $0x2c4] sm:$0xf]  ;;  %v3783_v14 = vor.u32 %v4991_v62, %v3780_v0 }
 0x252   : > { %v3938_v6 = vld [vmem:[%s5950_s14 + $0x200] sm:$0xf]  ;;  %v3683_v16 = vor.u32 %v4971_v3, %v3682_v2  ;;  %2426 = vmatpush.bf16.msra.mxu3 %v4483_v9  ;;  %v4036_v2 = vld [vmem:[%s5950_s14 + $0x2e0] sm:$0xf0]  ;;  %v4071_v3 = vor.u32 %v5063_v55, %v4068_v57  ;;  %v4426_v55 = vld [vmem:[%s5950_s14 + $0x5c8] sm:$0xf] }
 0x253   : > { %v5035_v7 = vld [vmem:[%s5950_s14 + $0x21c] sm:$0xf0]  ;;  %v5119_v9 = vld [vmem:[%s5950_s14 + $0x4c4] sm:$0xf]  ;;  %v4039_v15 = vor.u32 %v5055_v1, %v4036_v2  ;;  %v3882_v1 = vld [vmem:[%s5950_s14 + $0x188] sm:$0xf] }
 0x254   : > { %v4194_v8 = vld [vmem:[%s5950_s14 + $0x400] sm:$0xf]  ;;  %v3939_v20 = vor.u32 %v5035_v7, %v3938_v6  ;;  %2388 = vmatpush.bf16.msra.mxu0 %v3683_v16  ;;  %v6142_v6 = vld [vmem:[#allocation1 + $0x1b] sm:$0xff] }
 0x255   : > { %v5099_v10 = vld [vmem:[%s5950_s14 + $0x41c] sm:$0xf0]  ;;  %v6144_v7 = vld [vmem:[#allocation1] sm:$0xff]  ;;  %v3748_v18 = vld [vmem:[%s5950_s14 + $0xa0] sm:$0xf0] }
 0x256   : > { %v4450_v11 = vld [vmem:[%s5950_s14 + $0x600] sm:$0xf]  ;;  %v4195_v21 = vor.u32 %v5099_v10, %v4194_v8  ;;  %2401 = vmatpush.bf16.msra.mxu1 %v3939_v20  ;;  %v4583_v8 = vor.u32 %v5191_v60, %v4580_v61  ;;  %v4292_v10 = vld [vmem:[%s5950_s14 + $0x4e0] sm:$0xf0]  ;;  %v5220_v60 = vld [vmem:[%s5950_s14 + $0x7e4] sm:$0xf0] }
 0x257   : > { %v5163_v12 = vld [vmem:[%s5950_s14 + $0x61c] sm:$0xf0]  ;;  %2389 = vmatmul.bf16.vlgmr.msra.gmra.mxu0 %v6144_v7  ;;  %v4295_v16 = vor.u32 %v5119_v9, %v4292_v10  ;;  %v5047_v19 = vld [vmem:[%s5950_s14 + $0x284] sm:$0xf]  ;;  %v5020_v2 = vld [vmem:[%s5950_s14 + $0x1a4] sm:$0xf0] }
 0x258   : > { %v4451_v23 = vor.u32 %v5163_v12, %v4450_v11  ;;  %2414 = vmatpush.bf16.msra.mxu2 %v4195_v21  ;;  %2433 = vmatpush.bf16.msrb.mxu0 %v3911_v25  ;;  %v6140_v5 = vld [vmem:[#allocation1 + $0x12] sm:$0xff]  ;;  %v6149_v11 = vld [vmem:[#allocation1 + $0x9] sm:$0xff]  ;;  %v4394_v9 = vld [vmem:[%s5950_s14 + $0x588] sm:$0xf] }
 0x259   : > { %v5183_v12 = vld [vmem:[%s5950_s14 + $0x6c4] sm:$0xf]  ;;  %2402 = vmatmul.bf16.vlgmr.msra.gmra.mxu1 %v6149_v11  ;;  %v5148_v10 = vld [vmem:[%s5950_s14 + $0x5a4] sm:$0xf0] }
 0x25a   : > { %2427 = vmatpush.bf16.msra.mxu3 %v4451_v23  ;;  %2446 = vmatpush.bf16.msrb.mxu1 %v4167_v26  ;;  %v4551_v20 = vor.u32 %v5183_v12, %v4548_v13  ;;  %v4004_v21 = vld [vmem:[%s5950_s14 + $0x2a0] sm:$0xf0]  ;;  %v3751_v26 = vor.u32 %v4983_v17, %v3748_v18  ;;  %v4650_v12 = vld [vmem:[%s5950_s14 + $0x788] sm:$0xf] }
 0x25b   : > { %2415 = vmatmul.bf16.vlgmr.msra.gmra.mxu2 %v6140_v5  ;;  %v5111_v22 = vld [vmem:[%s5950_s14 + $0x484] sm:$0xf]  ;;  %v5212_v13 = vld [vmem:[%s5950_s14 + $0x7a4] sm:$0xf0] }
 0x25c   : > { %2459 = vmatpush.bf16.msrb.mxu2 %v4423_v27  ;;  %2434 = vmatpush.bf16.msrb.mxu0 %v3879_v37  ;;  %v4260_v24 = vld [vmem:[%s5950_s14 + $0x4a0] sm:$0xf0]  ;;  %v4007_v27 = vor.u32 %v5047_v19, %v4004_v21  ;;  %v3850_v17 = vld [vmem:[%s5950_s14 + $0x148] sm:$0xf] }
 0x25d   : > { %2428 = vmatmul.bf16.vlgmr.msra.gmra.mxu3 %v6142_v6  ;;  %v5175_v23 = vld [vmem:[%s5950_s14 + $0x684] sm:$0xf]  ;;  %v4263_v28 = vor.u32 %v5111_v22, %v4260_v24  ;;  %v5012_v18 = vld [vmem:[%s5950_s14 + $0x164] sm:$0xf0] }
 0x25e   : > { %2472 = vmatpush.bf16.msrb.mxu3 %v4679_v31  ;;  %2447 = vmatpush.bf16.msrb.mxu1 %v4135_v40  ;;  %v4516_v25 = vld [vmem:[%s5950_s14 + $0x6a0] sm:$0xf0]  ;;  %v4106_v19 = vld [vmem:[%s5950_s14 + $0x348] sm:$0xf] }
 0x25f   : > { %v4975_v29 = vld [vmem:[%s5950_s14 + $0x44] sm:$0xf]  ;;  %v4519_v32 = vor.u32 %v5175_v23, %v4516_v25  ;;  %v5076_v21 = vld [vmem:[%s5950_s14 + $0x364] sm:$0xf0] }
 0x260   : > { %2460 = vmatpush.bf16.msrb.mxu2 %v4391_v41  ;;  %2435 = vmatpush.bf16.msrb.mxu0 %v3847_v50  ;;  %v3716_v30 = vld [vmem:[%s5950_s14 + $0x60] sm:$0xf0]  ;;  %v3914_v50 = vld [vmem:[%s5950_s14 + $0x1c8] sm:$0xf] }
 0x261   : > { %v5039_v31 = vld [vmem:[%s5950_s14 + $0x244] sm:$0xf]  ;;  %v3719_v38 = vor.u32 %v4975_v29, %v3716_v30  ;;  %v4362_v22 = vld [vmem:[%s5950_s14 + $0x548] sm:$0xf] }
 0x262   : > { %2473 = vmatpush.bf16.msrb.mxu3 %v4647_v45  ;;  %2448 = vmatpush.bf16.msrb.mxu1 %v4103_v51  ;;  %v3972_v33 = vld [vmem:[%s5950_s14 + $0x260] sm:$0xf0]  ;;  %v5028_v51 = vld [vmem:[%s5950_s14 + $0x1e4] sm:$0xf0] }
 0x263   : > { %v5103_v34 = vld [vmem:[%s5950_s14 + $0x444] sm:$0xf]  ;;  %v3975_v41 = vor.u32 %v5039_v31, %v3972_v33  ;;  %v3915_v62 = vor.u32 %v5028_v51, %v3914_v50  ;;  %v5140_v24 = vld [vmem:[%s5950_s14 + $0x564] sm:$0xf0] }
 0x264   : > { %2461 = vmatpush.bf16.msrb.mxu2 %v4359_v52  ;;  %2436 = vmatpush.bf16.msrb.mxu0 %v3815_v63  ;;  %v4228_v35 = vld [vmem:[%s5950_s14 + $0x460] sm:$0xf0]  ;;  %v4170_v52 = vld [vmem:[%s5950_s14 + $0x3c8] sm:$0xf] }
 0x265   : > { %v5167_v36 = vld [vmem:[%s5950_s14 + $0x644] sm:$0xf]  ;;  %v4231_v42 = vor.u32 %v5103_v34, %v4228_v35  ;;  %v4171_v63 = vor.u32 %v5092_v54, %v4170_v52  ;;  %v4618_v23 = vld [vmem:[%s5950_s14 + $0x748] sm:$0xf] }
 0x266   : > { %2474 = vmatpush.bf16.msrb.mxu3 %v4615_v56  ;;  %2449 = vmatpush.bf16.msrb.mxu1 %v4071_v3  ;;  %v4484_v37 = vld [vmem:[%s5950_s14 + $0x660] sm:$0xf0]  ;;  %v5156_v56 = vld [vmem:[%s5950_s14 + $0x5e4] sm:$0xf0] }
 0x267   : > { %v4967_v39 = vld [vmem:[%s5950_s14 + $0x4] sm:$0xf]  ;;  %v4487_v46 = vor.u32 %v5167_v36, %v4484_v37  ;;  %v4427_v0 = vor.u32 %v5156_v56, %v4426_v55  ;;  %v4138_v3 = vld [vmem:[%s5950_s14 + $0x388] sm:$0xf] }
 0x268   : > { %2462 = vmatpush.bf16.msrb.mxu2 %v4327_v4  ;;  %2437 = vmatpush.bf16.msrb.mxu0 %v3783_v14  ;;  %v3684_v40 = vld [vmem:[%s5950_s14 + $0x20] sm:$0xf0]  ;;  %v4683_v4 = vor.u32 %v5220_v60, %v4682_v59  ;;  %v3883_v14 = vor.u32 %v5020_v2, %v3882_v1  ;;  %v5204_v25 = vld [vmem:[%s5950_s14 + $0x764] sm:$0xf0] }
 0x269   : > { %v5031_v43 = vld [vmem:[%s5950_s14 + $0x204] sm:$0xf]  ;;  %v3687_v53 = vor.u32 %v4967_v39, %v3684_v40  ;;  %v3818_v29 = vld [vmem:[%s5950_s14 + $0x108] sm:$0xf] }
 0x26a   : > { %2475 = vmatpush.bf16.msrb.mxu3 %v4583_v8  ;;  %2450 = vmatpush.bf16.msrb.mxu1 %v4039_v15  ;;  %v3940_v44 = vld [vmem:[%s5950_s14 + $0x220] sm:$0xf0]  ;;  %v5084_v8 = vld [vmem:[%s5950_s14 + $0x3a4] sm:$0xf0] }
 0x26b   : > { %v5095_v45 = vld [vmem:[%s5950_s14 + $0x404] sm:$0xf]  ;;  %v3943_v57 = vor.u32 %v5031_v43, %v3940_v44  ;;  %v4139_v15 = vor.u32 %v5084_v8, %v4138_v3  ;;  %v5004_v30 = vld [vmem:[%s5950_s14 + $0x124] sm:$0xf0] }
 0x26c   : > { %2463 = vmatpush.bf16.msrb.mxu2 %v4295_v16  ;;  %2438 = vmatpush.bf16.msrb.mxu0 %v3751_v26  ;;  %v4196_v47 = vld [vmem:[%s5950_s14 + $0x420] sm:$0xf0]  ;;  %v4395_v16 = vor.u32 %v5148_v10, %v4394_v9  ;;  %v3851_v26 = vor.u32 %v5012_v18, %v3850_v17  ;;  %v4074_v31 = vld [vmem:[%s5950_s14 + $0x308] sm:$0xf] }
 0x26d   : > { %v5159_v48 = vld [vmem:[%s5950_s14 + $0x604] sm:$0xf]  ;;  %v4199_v58 = vor.u32 %v5095_v45, %v4196_v47  ;;  %v5068_v33 = vld [vmem:[%s5950_s14 + $0x324] sm:$0xf0] }
 0x26e   : > { %2476 = vmatpush.bf16.msrb.mxu3 %v4551_v20  ;;  %2451 = vmatpush.bf16.msrb.mxu1 %v4007_v27  ;;  %v4452_v49 = vld [vmem:[%s5950_s14 + $0x620] sm:$0xf0]  ;;  %v4651_v20 = vor.u32 %v5212_v13, %v4650_v12  ;;  %v4107_v27 = vor.u32 %v5076_v21, %v4106_v19  ;;  %v4330_v34 = vld [vmem:[%s5950_s14 + $0x508] sm:$0xf]  ;;  %v4075_v39 = vor.u32 %v5068_v33, %v4074_v31  ;;  %v5152_v31 = vld [vmem:[%s5950_s14 + $0x5cc] sm:$0xf] }
 0x26f   : > { %v4455_v61 = vor.u32 %v5159_v48, %v4452_v49  ;;  %v5132_v35 = vld [vmem:[%s5950_s14 + $0x524] sm:$0xf0] }
 0x270   : > { %2464 = vmatpush.bf16.msrb.mxu2 %v4263_v28  ;;  %2439 = vmatpush.bf16.msrb.mxu0 %v3719_v38  ;;  %v4363_v28 = vor.u32 %v5140_v24, %v4362_v22  ;;  %v4586_v36 = vld [vmem:[%s5950_s14 + $0x708] sm:$0xf]  ;;  %v3819_v38 = vor.u32 %v5004_v30, %v3818_v29  ;;  %v4331_v40 = vor.u32 %v5132_v35, %v4330_v34  ;;  %v4172_v30 = vld [vmem:[%s5950_s14 + $0x3e8] sm:$0xf0] }
 0x271   : > { %v5196_v37 = vld [vmem:[%s5950_s14 + $0x724] sm:$0xf0]  ;;  %v5216_v35 = vld [vmem:[%s5950_s14 + $0x7cc] sm:$0xf] }
 0x272   : > { %2477 = vmatpush.bf16.msrb.mxu3 %v4519_v32  ;;  %2452 = vmatpush.bf16.msrb.mxu1 %v3975_v41  ;;  %v4619_v32 = vor.u32 %v5204_v25, %v4618_v23  ;;  %v3786_v41 = vld [vmem:[%s5950_s14 + $0xc8] sm:$0xf]  ;;  %v4587_v44 = vor.u32 %v5196_v37, %v4586_v36  ;;  %v4684_v36 = vld [vmem:[%s5950_s14 + $0x7e8] sm:$0xf0] }
 0x273   : > { %v4042_v43 = vld [vmem:[%s5950_s14 + $0x2c8] sm:$0xf] }
 0x274   : > { %2465 = vmatpush.bf16.msrb.mxu2 %v4231_v42  ;;  %2440 = vmatpush.bf16.msrb.mxu0 %v3687_v53  ;;  %v4996_v42 = vld [vmem:[%s5950_s14 + $0xe4] sm:$0xf0] }
 0x275   : > { %v5060_v45 = vld [vmem:[%s5950_s14 + $0x2e4] sm:$0xf0]  ;;  %v3787_v50 = vor.u32 %v4996_v42, %v3786_v41  ;;  %v5016_v41 = vld [vmem:[%s5950_s14 + $0x18c] sm:$0xf] }
 0x276   : > { %2478 = vmatpush.bf16.msrb.mxu3 %v4487_v46  ;;  %2453 = vmatpush.bf16.msrb.mxu1 %v3943_v57  ;;  %v4298_v46 = vld [vmem:[%s5950_s14 + $0x4c8] sm:$0xf]  ;;  %v4043_v51 = vor.u32 %v5060_v45, %v4042_v43  ;;  %v3884_v42 = vld [vmem:[%s5950_s14 + $0x1a8] sm:$0xf0] }
 0x277   : > { %2441 = vmatmul.bf16.vlgmr.msrb.gmra.mxu0 %v6144_v7  ;;  %v5124_v47 = vld [vmem:[%s5950_s14 + $0x4e4] sm:$0xf0]  ;;  %v5080_v43 = vld [vmem:[%s5950_s14 + $0x38c] sm:$0xf] }
 0x278   : > { %2466 = vmatpush.bf16.msrb.mxu2 %v4199_v58  ;;  %2485 = vmatpush.bf16.msra.mxu0 %v3915_v62  ;;  %v4554_v48 = vld [vmem:[%s5950_s14 + $0x6c8] sm:$0xf]  ;;  %v4299_v52 = vor.u32 %v5124_v47, %v4298_v46  ;;  %v4140_v45 = vld [vmem:[%s5950_s14 + $0x3a8] sm:$0xf0] }
 0x279   : > { %2454 = vmatmul.bf16.vlgmr.msrb.gmra.mxu1 %v6149_v11  ;;  %v5188_v49 = vld [vmem:[%s5950_s14 + $0x6e4] sm:$0xf0]  ;;  %v5144_v46 = vld [vmem:[%s5950_s14 + $0x58c] sm:$0xf] }
 0x27a   : > { %2479 = vmatpush.bf16.msrb.mxu3 %v4455_v61  ;;  %2498 = vmatpush.bf16.msra.mxu1 %v4171_v63  ;;  %v3754_v53 = vld [vmem:[%s5950_s14 + $0x88] sm:$0xf]  ;;  %v4555_v56 = vor.u32 %v5188_v49, %v4554_v48  ;;  %v4396_v47 = vld [vmem:[%s5950_s14 + $0x5a8] sm:$0xf0] }
 0x27b   : > { %2467 = vmatmul.bf16.vlgmr.msrb.gmra.mxu2 %v6140_v5  ;;  %v4988_v54 = vld [vmem:[%s5950_s14 + $0xa4] sm:$0xf0]  ;;  %v5208_v48 = vld [vmem:[%s5950_s14 + $0x78c] sm:$0xf] }
 0x27c   : > { %2511 = vmatpush.bf16.msra.mxu2 %v4427_v0  ;;  %2486 = vmatpush.bf16.msra.mxu0 %v3883_v14  ;;  %v4010_v55 = vld [vmem:[%s5950_s14 + $0x288] sm:$0xf]  ;;  %v3755_v62 = vor.u32 %v4988_v54, %v3754_v53  ;;  %v4652_v49 = vld [vmem:[%s5950_s14 + $0x7a8] sm:$0xf0] }
 0x27d   : > { %2480 = vmatmul.bf16.vlgmr.msrb.gmra.mxu3 %v6142_v6  ;;  %v5052_v57 = vld [vmem:[%s5950_s14 + $0x2a4] sm:$0xf0]  ;;  %v5008_v53 = vld [vmem:[%s5950_s14 + $0x14c] sm:$0xf] }
 0x27e   : > { %2524 = vmatpush.bf16.msra.mxu3 %v4683_v4  ;;  %2499 = vmatpush.bf16.msra.mxu1 %v4139_v15  ;;  %v4266_v58 = vld [vmem:[%s5950_s14 + $0x488] sm:$0xf]  ;;  %v4011_v63 = vor.u32 %v5052_v57, %v4010_v55  ;;  %v3852_v54 = vld [vmem:[%s5950_s14 + $0x168] sm:$0xf0] }
 0x27f   : > { %v5116_v59 = vld [vmem:[%s5950_s14 + $0x4a4] sm:$0xf0]  ;;  %v5072_v55 = vld [vmem:[%s5950_s14 + $0x34c] sm:$0xf] }
 0x280   : > { %2512 = vmatpush.bf16.msra.mxu2 %v4395_v16  ;;  %2487 = vmatpush.bf16.msra.mxu0 %v3851_v26  ;;  %v4522_v60 = vld [vmem:[%s5950_s14 + $0x688] sm:$0xf]  ;;  %v4267_v0 = vor.u32 %v5116_v59, %v4266_v58  ;;  %v5024_v26 = vld [vmem:[%s5950_s14 + $0x1cc] sm:$0xf] }
 0x281   : > { %v5180_v61 = vld [vmem:[%s5950_s14 + $0x6a4] sm:$0xf0]  ;;  %v4108_v57 = vld [vmem:[%s5950_s14 + $0x368] sm:$0xf0] }
 0x282   : > { %2525 = vmatpush.bf16.msra.mxu3 %v4651_v20  ;;  %2500 = vmatpush.bf16.msra.mxu1 %v4107_v27  ;;  %v3722_v1 = vld [vmem:[%s5950_s14 + $0x48] sm:$0xf]  ;;  %v4523_v4 = vor.u32 %v5180_v61, %v4522_v60  ;;  %v3916_v27 = vld [vmem:[%s5950_s14 + $0x1e8] sm:$0xf0] }
 0x283   : > { %v4980_v2 = vld [vmem:[%s5950_s14 + $0x64] sm:$0xf0]  ;;  %v5136_v58 = vld [vmem:[%s5950_s14 + $0x54c] sm:$0xf] }
 0x284   : > { %2513 = vmatpush.bf16.msra.mxu2 %v4363_v28  ;;  %2488 = vmatpush.bf16.msra.mxu0 %v3819_v38  ;;  %v3978_v3 = vld [vmem:[%s5950_s14 + $0x248] sm:$0xf]  ;;  %v3723_v14 = vor.u32 %v4980_v2, %v3722_v1  ;;  %v5088_v28 = vld [vmem:[%s5950_s14 + $0x3cc] sm:$0xf]  ;;  %v3919_v38 = vor.u32 %v5024_v26, %v3916_v27 }
 0x285   : > { %v5044_v8 = vld [vmem:[%s5950_s14 + $0x264] sm:$0xf0]  ;;  %v4364_v59 = vld [vmem:[%s5950_s14 + $0x568] sm:$0xf0] }
 0x286   : > { %2526 = vmatpush.bf16.msra.mxu3 %v4619_v32  ;;  %2501 = vmatpush.bf16.msra.mxu1 %v4075_v39  ;;  %v4234_v9 = vld [vmem:[%s5950_s14 + $0x448] sm:$0xf]  ;;  %v3979_v17 = vor.u32 %v5044_v8, %v3978_v3  ;;  %v4428_v32 = vld [vmem:[%s5950_s14 + $0x5e8] sm:$0xf0]  ;;  %v4175_v39 = vor.u32 %v5088_v28, %v4172_v30 }
 0x287   : > { %v5108_v10 = vld [vmem:[%s5950_s14 + $0x464] sm:$0xf0]  ;;  %v5200_v60 = vld [vmem:[%s5950_s14 + $0x74c] sm:$0xf] }
 0x288   : > { %2514 = vmatpush.bf16.msra.mxu2 %v4331_v40  ;;  %2489 = vmatpush.bf16.msra.mxu0 %v3787_v50  ;;  %v4490_v12 = vld [vmem:[%s5950_s14 + $0x648] sm:$0xf]  ;;  %v4235_v18 = vor.u32 %v5108_v10, %v4234_v9  ;;  %v4431_v40 = vor.u32 %v5152_v31, %v4428_v32  ;;  %v3887_v50 = vor.u32 %v5016_v41, %v3884_v42  ;;  %v4620_v61 = vld [vmem:[%s5950_s14 + $0x768] sm:$0xf0] }
 0x289   : > { %v5172_v13 = vld [vmem:[%s5950_s14 + $0x664] sm:$0xf0]  ;;  %v5000_v1 = vld [vmem:[%s5950_s14 + $0x10c] sm:$0xf] }
 0x28a   : > { %2527 = vmatpush.bf16.msra.mxu3 %v4587_v44  ;;  %2502 = vmatpush.bf16.msra.mxu1 %v4043_v51  ;;  %v3690_v15 = vld [vmem:[%s5950_s14 + $0x8] sm:$0xf]  ;;  %v4491_v22 = vor.u32 %v5172_v13, %v4490_v12  ;;  %v4687_v44 = vor.u32 %v5216_v35, %v4684_v36  ;;  %v4143_v51 = vor.u32 %v5080_v43, %v4140_v45  ;;  %v3820_v2 = vld [vmem:[%s5950_s14 + $0x128] sm:$0xf0] }
 0x28b   : > { %v4972_v16 = vld [vmem:[%s5950_s14 + $0x24] sm:$0xf0]  ;;  %v5064_v3 = vld [vmem:[%s5950_s14 + $0x30c] sm:$0xf] }
 0x28c   : > { %2515 = vmatpush.bf16.msra.mxu2 %v4299_v52  ;;  %2490 = vmatpush.bf16.msra.mxu0 %v3755_v62  ;;  %v3946_v19 = vld [vmem:[%s5950_s14 + $0x208] sm:$0xf]  ;;  %v3691_v29 = vor.u32 %v4972_v16, %v3690_v15  ;;  %v4399_v52 = vor.u32 %v5144_v46, %v4396_v47  ;;  %v3855_v62 = vor.u32 %v5008_v53, %v3852_v54  ;;  %v4076_v8 = vld [vmem:[%s5950_s14 + $0x328] sm:$0xf0] }
 0x28d   : > { %v5036_v20 = vld [vmem:[%s5950_s14 + $0x224] sm:$0xf0]  ;;  %v5128_v9 = vld [vmem:[%s5950_s14 + $0x50c] sm:$0xf]  ;;  %v4079_v15 = vor.u32 %v5064_v3, %v4076_v8  ;;  %v4434_v3 = vld [vmem:[%s5950_s14 + $0x5d0] sm:$0xf] }
 0x28e   : > { %2528 = vmatpush.bf16.msra.mxu3 %v4555_v56  ;;  %2503 = vmatpush.bf16.msra.mxu1 %v4011_v63  ;;  %v4202_v21 = vld [vmem:[%s5950_s14 + $0x408] sm:$0xf]  ;;  %v3947_v33 = vor.u32 %v5036_v20, %v3946_v19  ;;  %v4655_v56 = vor.u32 %v5208_v48, %v4652_v49  ;;  %v4111_v63 = vor.u32 %v5072_v55, %v4108_v57  ;;  %v4332_v10 = vld [vmem:[%s5950_s14 + $0x528] sm:$0xf0] }
 0x28f   : > { %v5100_v24 = vld [vmem:[%s5950_s14 + $0x424] sm:$0xf0]  ;;  %v5192_v12 = vld [vmem:[%s5950_s14 + $0x70c] sm:$0xf]  ;;  %v4335_v16 = vor.u32 %v5128_v9, %v4332_v10  ;;  %v4690_v10 = vld [vmem:[%s5950_s14 + $0x7d0] sm:$0xf] }
 0x290   : > { %2516 = vmatpush.bf16.msra.mxu2 %v4267_v0  ;;  %v4458_v23 = vld [vmem:[%s5950_s14 + $0x608] sm:$0xf]  ;;  %2491 = vmatpush.bf16.msra.mxu0 %v3723_v14  ;;  %v4203_v34 = vor.u32 %v5100_v24, %v4202_v21  ;;  %v4367_v0 = vor.u32 %v5136_v58, %v4364_v59  ;;  %v4588_v13 = vld [vmem:[%s5950_s14 + $0x728] sm:$0xf0]  ;;  %v3823_v14 = vor.u32 %v5000_v1, %v3820_v2  ;;  %v5093_v2 = vld [vmem:[%s5950_s14 + $0x3ec] sm:$0xf0] }
 0x291   : > { %v5164_v25 = vld [vmem:[%s5950_s14 + $0x624] sm:$0xf0]  ;;  %v5056_v19 = vld [vmem:[%s5950_s14 + $0x2cc] sm:$0xf]  ;;  %v4591_v20 = vor.u32 %v5192_v12, %v4588_v13  ;;  %v5221_v12 = vld [vmem:[%s5950_s14 + $0x7ec] sm:$0xf0] }
 0x292   : > { %2529 = vmatpush.bf16.msra.mxu3 %v4523_v4  ;;  %2504 = vmatpush.bf16.msra.mxu1 %v3979_v17  ;;  %v4459_v37 = vor.u32 %v5164_v25, %v4458_v23  ;;  %v4623_v4 = vor.u32 %v5200_v60, %v4620_v61  ;;  %v4992_v17 = vld [vmem:[%s5950_s14 + $0xcc] sm:$0xf] }
 0x293   : > { %v4044_v21 = vld [vmem:[%s5950_s14 + $0x2e8] sm:$0xf0] }
 0x294   : > { %2517 = vmatpush.bf16.msra.mxu2 %v4235_v18  ;;  %2492 = vmatpush.bf16.msra.mxu0 %v3691_v29  ;;  %v3788_v18 = vld [vmem:[%s5950_s14 + $0xe8] sm:$0xf0]  ;;  %v4047_v27 = vor.u32 %v5056_v19, %v4044_v21  ;;  %v4146_v19 = vld [vmem:[%s5950_s14 + $0x390] sm:$0xf] }
 0x295   : > { %v4300_v24 = vld [vmem:[%s5950_s14 + $0x4e8] sm:$0xf0]  ;;  %v3791_v26 = vor.u32 %v4992_v17, %v3788_v18  ;;  %v3890_v17 = vld [vmem:[%s5950_s14 + $0x190] sm:$0xf] }
 0x296   : > { %2530 = vmatpush.bf16.msra.mxu3 %v4491_v22  ;;  %2505 = vmatpush.bf16.msra.mxu1 %v3947_v33  ;;  %v5120_v22 = vld [vmem:[%s5950_s14 + $0x4cc] sm:$0xf]  ;;  %v5021_v18 = vld [vmem:[%s5950_s14 + $0x1ac] sm:$0xf0] }
 0x297   : > { %2493 = vmatmul.bf16.vlgmr.msra.gmra.mxu0 %v6144_v7  ;;  %v5184_v23 = vld [vmem:[%s5950_s14 + $0x6cc] sm:$0xf]  ;;  %v4303_v28 = vor.u32 %v5120_v22, %v4300_v24  ;;  %v5085_v21 = vld [vmem:[%s5950_s14 + $0x3ac] sm:$0xf0] }
 0x298   : > { %2518 = vmatpush.bf16.msra.mxu2 %v4203_v34  ;;  %2537 = vmatpush.bf16.msrb.mxu0 %v3919_v38  ;;  %v4556_v25 = vld [vmem:[%s5950_s14 + $0x6e8] sm:$0xf0]  ;;  %v4402_v22 = vld [vmem:[%s5950_s14 + $0x590] sm:$0xf] }
 0x299   : > { %2506 = vmatmul.bf16.vlgmr.msra.gmra.mxu1 %v6149_v11  ;;  %v4984_v29 = vld [vmem:[%s5950_s14 + $0x8c] sm:$0xf]  ;;  %v4559_v32 = vor.u32 %v5184_v23, %v4556_v25  ;;  %v5149_v24 = vld [vmem:[%s5950_s14 + $0x5ac] sm:$0xf0] }
 0x29a   : > { %2531 = vmatpush.bf16.msra.mxu3 %v4459_v37  ;;  %2550 = vmatpush.bf16.msrb.mxu1 %v4175_v39  ;;  %v3756_v30 = vld [vmem:[%s5950_s14 + $0xa8] sm:$0xf0]  ;;  %v4658_v23 = vld [vmem:[%s5950_s14 + $0x790] sm:$0xf] }
 0x29b   : > { %2519 = vmatmul.bf16.vlgmr.msra.gmra.mxu2 %v6140_v5  ;;  %v5048_v31 = vld [vmem:[%s5950_s14 + $0x28c] sm:$0xf]  ;;  %v3759_v38 = vor.u32 %v4984_v29, %v3756_v30  ;;  %v5213_v25 = vld [vmem:[%s5950_s14 + $0x7ac] sm:$0xf0] }
 0x29c   : > { %2563 = vmatpush.bf16.msrb.mxu2 %v4431_v40  ;;  %2538 = vmatpush.bf16.msrb.mxu0 %v3887_v50  ;;  %v4012_v33 = vld [vmem:[%s5950_s14 + $0x2a8] sm:$0xf0]  ;;  %v3858_v29 = vld [vmem:[%s5950_s14 + $0x150] sm:$0xf] }
 0x29d   : > { %2532 = vmatmul.bf16.vlgmr.msra.gmra.mxu3 %v6142_v6  ;;  %v5112_v34 = vld [vmem:[%s5950_s14 + $0x48c] sm:$0xf]  ;;  %v4015_v39 = vor.u32 %v5048_v31, %v4012_v33  ;;  %v5013_v30 = vld [vmem:[%s5950_s14 + $0x16c] sm:$0xf0] }
 0x29e   : > { %2576 = vmatpush.bf16.msrb.mxu3 %v4687_v44  ;;  %2551 = vmatpush.bf16.msrb.mxu1 %v4143_v51  ;;  %v4268_v35 = vld [vmem:[%s5950_s14 + $0x4a8] sm:$0xf0]  ;;  %v4114_v31 = vld [vmem:[%s5950_s14 + $0x350] sm:$0xf] }
 0x29f   : > { %v5176_v36 = vld [vmem:[%s5950_s14 + $0x68c] sm:$0xf]  ;;  %v4271_v40 = vor.u32 %v5112_v34, %v4268_v35  ;;  %v5077_v33 = vld [vmem:[%s5950_s14 + $0x36c] sm:$0xf0] }
 0x2a0   : > { %2564 = vmatpush.bf16.msrb.mxu2 %v4399_v52  ;;  %2539 = vmatpush.bf16.msrb.mxu0 %v3855_v62  ;;  %v4524_v37 = vld [vmem:[%s5950_s14 + $0x6a8] sm:$0xf0]  ;;  %v3922_v62 = vld [vmem:[%s5950_s14 + $0x1d0] sm:$0xf] }
 0x2a1   : > { %v4976_v41 = vld [vmem:[%s5950_s14 + $0x4c] sm:$0xf]  ;;  %v4527_v44 = vor.u32 %v5176_v36, %v4524_v37  ;;  %v4370_v34 = vld [vmem:[%s5950_s14 + $0x550] sm:$0xf] }
 0x2a2   : > { %2577 = vmatpush.bf16.msrb.mxu3 %v4655_v56  ;;  %2552 = vmatpush.bf16.msrb.mxu1 %v4111_v63  ;;  %v3724_v42 = vld [vmem:[%s5950_s14 + $0x68] sm:$0xf0]  ;;  %v5029_v63 = vld [vmem:[%s5950_s14 + $0x1ec] sm:$0xf0] }
 0x2a3   : > { %v5040_v43 = vld [vmem:[%s5950_s14 + $0x24c] sm:$0xf]  ;;  %v3727_v50 = vor.u32 %v4976_v41, %v3724_v42  ;;  %v5141_v35 = vld [vmem:[%s5950_s14 + $0x56c] sm:$0xf0] }
 0x2a4   : > { %2565 = vmatpush.bf16.msrb.mxu2 %v4367_v0  ;;  %2540 = vmatpush.bf16.msrb.mxu0 %v3823_v14  ;;  %v3980_v45 = vld [vmem:[%s5950_s14 + $0x268] sm:$0xf0]  ;;  %v4178_v0 = vld [vmem:[%s5950_s14 + $0x3d0] sm:$0xf]  ;;  %v3923_v14 = vor.u32 %v5029_v63, %v3922_v62 }
 0x2a5   : > { %v5104_v46 = vld [vmem:[%s5950_s14 + $0x44c] sm:$0xf]  ;;  %v3983_v53 = vor.u32 %v5040_v43, %v3980_v45  ;;  %v4626_v36 = vld [vmem:[%s5950_s14 + $0x750] sm:$0xf] }
 0x2a6   : > { %2578 = vmatpush.bf16.msrb.mxu3 %v4623_v4  ;;  %2553 = vmatpush.bf16.msrb.mxu1 %v4079_v15  ;;  %v4236_v47 = vld [vmem:[%s5950_s14 + $0x468] sm:$0xf0]  ;;  %v5157_v4 = vld [vmem:[%s5950_s14 + $0x5ec] sm:$0xf0]  ;;  %v4179_v15 = vor.u32 %v5093_v2, %v4178_v0 }
 0x2a7   : > { %v5168_v48 = vld [vmem:[%s5950_s14 + $0x64c] sm:$0xf]  ;;  %v4239_v54 = vor.u32 %v5104_v46, %v4236_v47  ;;  %v5205_v37 = vld [vmem:[%s5950_s14 + $0x76c] sm:$0xf0] }
 0x2a8   : > { %2566 = vmatpush.bf16.msrb.mxu2 %v4335_v16  ;;  %2541 = vmatpush.bf16.msrb.mxu0 %v3791_v26  ;;  %v4492_v49 = vld [vmem:[%s5950_s14 + $0x668] sm:$0xf0]  ;;  %v4435_v16 = vor.u32 %v5157_v4, %v4434_v3  ;;  %v3891_v26 = vor.u32 %v5021_v18, %v3890_v17  ;;  %v3826_v41 = vld [vmem:[%s5950_s14 + $0x110] sm:$0xf] }
 0x2a9   : > { %v4968_v51 = vld [vmem:[%s5950_s14 + $0xc] sm:$0xf]  ;;  %v4495_v58 = vor.u32 %v5168_v48, %v4492_v49  ;;  %v5005_v42 = vld [vmem:[%s5950_s14 + $0x12c] sm:$0xf0] }
 0x2aa   : > { %2579 = vmatpush.bf16.msrb.mxu3 %v4591_v20  ;;  %2554 = vmatpush.bf16.msrb.mxu1 %v4047_v27  ;;  %v3692_v52 = vld [vmem:[%s5950_s14 + $0x28] sm:$0xf0]  ;;  %v4691_v20 = vor.u32 %v5221_v12, %v4690_v10  ;;  %v4147_v27 = vor.u32 %v5085_v21, %v4146_v19  ;;  %v4082_v43 = vld [vmem:[%s5950_s14 + $0x310] sm:$0xf] }
 0x2ab   : > { %v5032_v55 = vld [vmem:[%s5950_s14 + $0x20c] sm:$0xf]  ;;  %v3695_v1 = vor.u32 %v4968_v51, %v3692_v52  ;;  %v5069_v45 = vld [vmem:[%s5950_s14 + $0x32c] sm:$0xf0] }
 0x2ac   : > { %2567 = vmatpush.bf16.msrb.mxu2 %v4303_v28  ;;  %2542 = vmatpush.bf16.msrb.mxu0 %v3759_v38  ;;  %v3948_v56 = vld [vmem:[%s5950_s14 + $0x228] sm:$0xf0]  ;;  %v4403_v28 = vor.u32 %v5149_v24, %v4402_v22  ;;  %v3859_v38 = vor.u32 %v5013_v30, %v3858_v29  ;;  %v4338_v46 = vld [vmem:[%s5950_s14 + $0x510] sm:$0xf]  ;;  %v4083_v51 = vor.u32 %v5069_v45, %v4082_v43  ;;  %v5153_v43 = vld [vmem:[%s5950_s14 + $0x5d4] sm:$0xf] }
 0x2ad   : > { %v5096_v57 = vld [vmem:[%s5950_s14 + $0x40c] sm:$0xf]  ;;  %v3951_v8 = vor.u32 %v5032_v55, %v3948_v56  ;;  %v5133_v47 = vld [vmem:[%s5950_s14 + $0x52c] sm:$0xf0] }
 0x2ae   : > { %2580 = vmatpush.bf16.msrb.mxu3 %v4559_v32  ;;  %2555 = vmatpush.bf16.msrb.mxu1 %v4015_v39  ;;  %v4204_v59 = vld [vmem:[%s5950_s14 + $0x428] sm:$0xf0]  ;;  %v4659_v32 = vor.u32 %v5213_v25, %v4658_v23  ;;  %v4115_v39 = vor.u32 %v5077_v33, %v4114_v31  ;;  %v4594_v48 = vld [vmem:[%s5950_s14 + $0x710] sm:$0xf]  ;;  %v4339_v52 = vor.u32 %v5133_v47, %v4338_v46  ;;  %v5217_v47 = vld [vmem:[%s5950_s14 + $0x7d4] sm:$0xf] }
 0x2af   : > { %v5160_v60 = vld [vmem:[%s5950_s14 + $0x60c] sm:$0xf]  ;;  %v4207_v9 = vor.u32 %v5096_v57, %v4204_v59  ;;  %v5197_v49 = vld [vmem:[%s5950_s14 + $0x72c] sm:$0xf0] }
 0x2b0   : > { %2568 = vmatpush.bf16.msrb.mxu2 %v4271_v40  ;;  %v4460_v61 = vld [vmem:[%s5950_s14 + $0x628] sm:$0xf0]  ;;  %2543 = vmatpush.bf16.msrb.mxu0 %v3727_v50  ;;  %v4371_v40 = vor.u32 %v5141_v35, %v4370_v34  ;;  %v3827_v50 = vor.u32 %v5005_v42, %v3826_v41  ;;  %v4050_v55 = vld [vmem:[%s5950_s14 + $0x2d0] sm:$0xf]  ;;  %v4595_v56 = vor.u32 %v5197_v49, %v4594_v48  ;;  %v4180_v42 = vld [vmem:[%s5950_s14 + $0x3f0] sm:$0xf0] }
 0x2b1   : > { %v4463_v13 = vor.u32 %v5160_v60, %v4460_v61  ;;  %v5061_v57 = vld [vmem:[%s5950_s14 + $0x2ec] sm:$0xf0]  ;;  %v4692_v48 = vld [vmem:[%s5950_s14 + $0x7f0] sm:$0xf0] }
 0x2b2   : > { %2581 = vmatpush.bf16.msrb.mxu3 %v4527_v44  ;;  %2556 = vmatpush.bf16.msrb.mxu1 %v3983_v53  ;;  %v4627_v44 = vor.u32 %v5205_v37, %v4626_v36  ;;  %v3794_v53 = vld [vmem:[%s5950_s14 + $0xd0] sm:$0xf]  ;;  %v4051_v63 = vor.u32 %v5061_v57, %v4050_v55  ;;  %v5081_v55 = vld [vmem:[%s5950_s14 + $0x394] sm:$0xf] }
 0x2b3   : > { %v5125_v59 = vld [vmem:[%s5950_s14 + $0x4ec] sm:$0xf0]  ;;  %v4148_v57 = vld [vmem:[%s5950_s14 + $0x3b0] sm:$0xf0] }
 0x2b4   : > { %2569 = vmatpush.bf16.msrb.mxu2 %v4239_v54  ;;  %2544 = vmatpush.bf16.msrb.mxu0 %v3695_v1  ;;  %v4997_v54 = vld [vmem:[%s5950_s14 + $0xec] sm:$0xf0] }
 0x2b5   : > { %v4562_v60 = vld [vmem:[%s5950_s14 + $0x6d0] sm:$0xf]  ;;  %v3795_v62 = vor.u32 %v4997_v54, %v3794_v53  ;;  %v5017_v53 = vld [vmem:[%s5950_s14 + $0x194] sm:$0xf] }
 0x2b6   : > { %2582 = vmatpush.bf16.msrb.mxu3 %v4495_v58  ;;  %2557 = vmatpush.bf16.msrb.mxu1 %v3951_v8  ;;  %v4306_v58 = vld [vmem:[%s5950_s14 + $0x4d0] sm:$0xf]  ;;  %v3892_v54 = vld [vmem:[%s5950_s14 + $0x1b0] sm:$0xf0] }
 0x2b7   : > { %2545 = vmatmul.bf16.vlgmr.msrb.gmra.mxu0 %v6144_v7  ;;  %v5189_v61 = vld [vmem:[%s5950_s14 + $0x6ec] sm:$0xf0]  ;;  %v4307_v0 = vor.u32 %v5125_v59, %v4306_v58  ;;  %v5145_v58 = vld [vmem:[%s5950_s14 + $0x594] sm:$0xf] }
 0x2b8   : > { %2570 = vmatpush.bf16.msrb.mxu2 %v4207_v9  ;;  %2589 = vmatpush.bf16.msra.mxu0 %v3923_v14  ;;  %v3762_v1 = vld [vmem:[%s5950_s14 + $0x90] sm:$0xf]  ;;  %v4563_v4 = vor.u32 %v5189_v61, %v4562_v60  ;;  %v4404_v59 = vld [vmem:[%s5950_s14 + $0x5b0] sm:$0xf0] }
 0x2b9   : > { %2558 = vmatmul.bf16.vlgmr.msrb.gmra.mxu1 %v6149_v11  ;;  %v4989_v2 = vld [vmem:[%s5950_s14 + $0xac] sm:$0xf0]  ;;  %v5209_v60 = vld [vmem:[%s5950_s14 + $0x794] sm:$0xf] }
 0x2ba   : > { %2583 = vmatpush.bf16.msrb.mxu3 %v4463_v13  ;;  %2602 = vmatpush.bf16.msra.mxu1 %v4179_v15  ;;  %v4018_v3 = vld [vmem:[%s5950_s14 + $0x290] sm:$0xf]  ;;  %v3763_v14 = vor.u32 %v4989_v2, %v3762_v1  ;;  %v4660_v61 = vld [vmem:[%s5950_s14 + $0x7b0] sm:$0xf0] }
 0x2bb   : > { %2571 = vmatmul.bf16.vlgmr.msrb.gmra.mxu2 %v6140_v5  ;;  %v5053_v8 = vld [vmem:[%s5950_s14 + $0x2ac] sm:$0xf0]  ;;  %v5009_v1 = vld [vmem:[%s5950_s14 + $0x154] sm:$0xf] }
 0x2bc   : > { %2615 = vmatpush.bf16.msra.mxu2 %v4435_v16  ;;  %2590 = vmatpush.bf16.msra.mxu0 %v3891_v26  ;;  %v4274_v9 = vld [vmem:[%s5950_s14 + $0x490] sm:$0xf]  ;;  %v4019_v15 = vor.u32 %v5053_v8, %v4018_v3  ;;  %v3860_v2 = vld [vmem:[%s5950_s14 + $0x170] sm:$0xf0] }
 0x2bd   : > { %2584 = vmatmul.bf16.vlgmr.msrb.gmra.mxu3 %v6142_v6  ;;  %v5117_v10 = vld [vmem:[%s5950_s14 + $0x4ac] sm:$0xf0]  ;;  %v5073_v3 = vld [vmem:[%s5950_s14 + $0x354] sm:$0xf] }
 0x2be   : > { %2628 = vmatpush.bf16.msra.mxu3 %v4691_v20  ;;  %2603 = vmatpush.bf16.msra.mxu1 %v4147_v27  ;;  %v4530_v12 = vld [vmem:[%s5950_s14 + $0x690] sm:$0xf]  ;;  %v4275_v16 = vor.u32 %v5117_v10, %v4274_v9  ;;  %v4116_v8 = vld [vmem:[%s5950_s14 + $0x370] sm:$0xf0] }
 0x2bf   : > { %v5181_v13 = vld [vmem:[%s5950_s14 + $0x6ac] sm:$0xf0]  ;;  %v5137_v9 = vld [vmem:[%s5950_s14 + $0x554] sm:$0xf] }
 0x2c0   : > { %2616 = vmatpush.bf16.msra.mxu2 %v4403_v28  ;;  %2591 = vmatpush.bf16.msra.mxu0 %v3859_v38  ;;  %v3730_v17 = vld [vmem:[%s5950_s14 + $0x50] sm:$0xf]  ;;  %v4531_v20 = vor.u32 %v5181_v13, %v4530_v12  ;;  %v5025_v38 = vld [vmem:[%s5950_s14 + $0x1d4] sm:$0xf] }
 0x2c1   : > { %v4981_v18 = vld [vmem:[%s5950_s14 + $0x6c] sm:$0xf0]  ;;  %v4372_v10 = vld [vmem:[%s5950_s14 + $0x570] sm:$0xf0] }
 0x2c2   : > { %2629 = vmatpush.bf16.msra.mxu3 %v4659_v32  ;;  %2604 = vmatpush.bf16.msra.mxu1 %v4115_v39  ;;  %v3986_v19 = vld [vmem:[%s5950_s14 + $0x250] sm:$0xf]  ;;  %v3731_v26 = vor.u32 %v4981_v18, %v3730_v17  ;;  %v3924_v39 = vld [vmem:[%s5950_s14 + $0x1f0] sm:$0xf0] }
 0x2c3   : > { %v5045_v21 = vld [vmem:[%s5950_s14 + $0x26c] sm:$0xf0]  ;;  %v5201_v12 = vld [vmem:[%s5950_s14 + $0x754] sm:$0xf] }
 0x2c4   : > { %2617 = vmatpush.bf16.msra.mxu2 %v4371_v40  ;;  %2592 = vmatpush.bf16.msra.mxu0 %v3827_v50  ;;  %v4242_v22 = vld [vmem:[%s5950_s14 + $0x450] sm:$0xf]  ;;  %v3987_v29 = vor.u32 %v5045_v21, %v3986_v19  ;;  %v5089_v40 = vld [vmem:[%s5950_s14 + $0x3d4] sm:$0xf]  ;;  %v3927_v50 = vor.u32 %v5025_v38, %v3924_v39 }
 0x2c5   : > { %v5109_v24 = vld [vmem:[%s5950_s14 + $0x46c] sm:$0xf0]  ;;  %v4628_v13 = vld [vmem:[%s5950_s14 + $0x770] sm:$0xf0] }
 0x2c6   : > { %2630 = vmatpush.bf16.msra.mxu3 %v4627_v44  ;;  %2605 = vmatpush.bf16.msra.mxu1 %v4083_v51  ;;  %v4498_v23 = vld [vmem:[%s5950_s14 + $0x650] sm:$0xf]  ;;  %v4243_v30 = vor.u32 %v5109_v24, %v4242_v22  ;;  %v4436_v44 = vld [vmem:[%s5950_s14 + $0x5f0] sm:$0xf0]  ;;  %v4183_v51 = vor.u32 %v5089_v40, %v4180_v42 }
 0x2c7   : > { %v5173_v25 = vld [vmem:[%s5950_s14 + $0x66c] sm:$0xf0]  ;;  %v3828_v17 = vld [vmem:[%s5950_s14 + $0x130] sm:$0xf0] }
 0x2c8   : > { %2618 = vmatpush.bf16.msra.mxu2 %v4339_v52  ;;  %2593 = vmatpush.bf16.msra.mxu0 %v3795_v62  ;;  %v3698_v27 = vld [vmem:[%s5950_s14 + $0x10] sm:$0xf]  ;;  %v4499_v34 = vor.u32 %v5173_v25, %v4498_v23  ;;  %v4439_v52 = vor.u32 %v5153_v43, %v4436_v44  ;;  %v3895_v62 = vor.u32 %v5017_v53, %v3892_v54  ;;  %v5065_v18 = vld [vmem:[%s5950_s14 + $0x314] sm:$0xf] }
 0x2c9   : > { %v4973_v28 = vld [vmem:[%s5950_s14 + $0x2c] sm:$0xf0]  ;;  %v4084_v19 = vld [vmem:[%s5950_s14 + $0x330] sm:$0xf0] }
 0x2ca   : > { %2631 = vmatpush.bf16.msra.mxu3 %v4595_v56  ;;  %2606 = vmatpush.bf16.msra.mxu1 %v4051_v63  ;;  %v3954_v31 = vld [vmem:[%s5950_s14 + $0x210] sm:$0xf]  ;;  %v3699_v41 = vor.u32 %v4973_v28, %v3698_v27  ;;  %v4695_v56 = vor.u32 %v5217_v47, %v4692_v48  ;;  %v4151_v63 = vor.u32 %v5081_v55, %v4148_v57  ;;  %v5193_v21 = vld [vmem:[%s5950_s14 + $0x714] sm:$0xf] }
 0x2cb   : > { %v5037_v32 = vld [vmem:[%s5950_s14 + $0x22c] sm:$0xf0]  ;;  %v4087_v24 = vor.u32 %v5065_v18, %v4084_v19  ;;  %v4993_v25 = vld [vmem:[%s5950_s14 + $0xd4] sm:$0xf]  ;;  %v4442_v19 = vld [vmem:[%s5950_s14 + $0x5d8] sm:$0xf] }
 0x2cc   : > { %2619 = vmatpush.bf16.msra.mxu2 %v4307_v0  ;;  %2594 = vmatpush.bf16.msra.mxu0 %v3763_v14  ;;  %v4210_v33 = vld [vmem:[%s5950_s14 + $0x410] sm:$0xf]  ;;  %v3955_v45 = vor.u32 %v5037_v32, %v3954_v31  ;;  %v4407_v0 = vor.u32 %v5145_v58, %v4404_v59  ;;  %v3863_v14 = vor.u32 %v5009_v1, %v3860_v2  ;;  %v5057_v27 = vld [vmem:[%s5950_s14 + $0x2d4] sm:$0xf] }
 0x2cd   : > { %v5101_v35 = vld [vmem:[%s5950_s14 + $0x42c] sm:$0xf0]  ;;  %v4308_v31 = vld [vmem:[%s5950_s14 + $0x4f0] sm:$0xf0] }
 0x2ce   : > { %2632 = vmatpush.bf16.msra.mxu3 %v4563_v4  ;;  %2607 = vmatpush.bf16.msra.mxu1 %v4019_v15  ;;  %v4466_v36 = vld [vmem:[%s5950_s14 + $0x610] sm:$0xf]  ;;  %v4211_v46 = vor.u32 %v5101_v35, %v4210_v33  ;;  %v4663_v4 = vor.u32 %v5209_v60, %v4660_v61  ;;  %v4119_v15 = vor.u32 %v5073_v3, %v4116_v8  ;;  %v5185_v32 = vld [vmem:[%s5950_s14 + $0x6d4] sm:$0xf] }
 0x2cf   : > { %v5165_v37 = vld [vmem:[%s5950_s14 + $0x62c] sm:$0xf0]  ;;  %v4564_v33 = vld [vmem:[%s5950_s14 + $0x6f0] sm:$0xf0] }
 0x2d0   : > { %2620 = vmatpush.bf16.msra.mxu2 %v4275_v16  ;;  %2595 = vmatpush.bf16.msra.mxu0 %v3731_v26  ;;  %v4467_v49 = vor.u32 %v5165_v37, %v4466_v36  ;;  %v4375_v16 = vor.u32 %v5137_v9, %v4372_v10  ;;  %v3796_v26 = vld [vmem:[%s5950_s14 + $0xf0] sm:$0xf0]  ;;  %v4567_v40 = vor.u32 %v5185_v32, %v4564_v33  ;;  %v4154_v32 = vld [vmem:[%s5950_s14 + $0x398] sm:$0xf] }
 0x2d1   : > { %v4985_v37 = vld [vmem:[%s5950_s14 + $0x94] sm:$0xf] }
 0x2d2   : > { %2633 = vmatpush.bf16.msra.mxu3 %v4531_v20  ;;  %2608 = vmatpush.bf16.msra.mxu1 %v3987_v29  ;;  %v4340_v20 = vld [vmem:[%s5950_s14 + $0x530] sm:$0xf0] }
 0x2d3   : > { %v4052_v29 = vld [vmem:[%s5950_s14 + $0x2f0] sm:$0xf0] }
 0x2d4   : > { %2621 = vmatpush.bf16.msra.mxu2 %v4243_v30  ;;  %2596 = vmatpush.bf16.msra.mxu0 %v3699_v41  ;;  %v5121_v30 = vld [vmem:[%s5950_s14 + $0x4d4] sm:$0xf]  ;;  %v4055_v35 = vor.u32 %v5057_v27, %v4052_v29  ;;  %v2390_v47 = vpop.f32.mrf.mxu0 }
 0x2d5   : > { %v4311_v36 = vor.u32 %v5121_v30, %v4308_v31  ;;  %v3764_v38 = vld [vmem:[%s5950_s14 + $0xb0] sm:$0xf0]  ;;  %v3898_v30 = vld [vmem:[%s5950_s14 + $0x198] sm:$0xf] }
 0x2d6   : > { %2634 = vmatpush.bf16.msra.mxu3 %v4499_v34  ;;  %2609 = vmatpush.bf16.msra.mxu1 %v3955_v45  ;;  %v3799_v34 = vor.u32 %v4993_v25, %v3796_v26  ;;  %v5049_v39 = vld [vmem:[%s5950_s14 + $0x294] sm:$0xf]  ;;  %v2403_v53 = vpop.f32.mrf.mxu1  ;;  %v5022_v31 = vld [vmem:[%s5950_s14 + $0x1b4] sm:$0xf0] }
 0x2d7   : > { %2597 = vmatmul.bf16.vlgmr.msra.gmra.mxu0 %v6144_v7  ;;  %v5129_v7 = vld [vmem:[%s5950_s14 + $0x514] sm:$0xf]  ;;  %v2404_v58 = vadd.f32 %v2403_v53, %v2390_v47  ;;  %v6473_v47 = vld [vmem:[#allocation1 + $0x12] sm:$0xff]  ;;  %v6482_v53 = vld [vmem:[#allocation1] sm:$0xff] }
 0x2d8   : > { %2622 = vmatpush.bf16.msra.mxu2 %v4211_v46  ;;  %2641 = vmatpush.bf16.msrb.mxu0 %v3927_v50  ;;  %v4343_v23 = vor.u32 %v5129_v7, %v4340_v20  ;;  %v4020_v41 = vld [vmem:[%s5950_s14 + $0x2b0] sm:$0xf0]  ;;  %v3767_v46 = vor.u32 %v4985_v37, %v3764_v38  ;;  %v5158_v7 = vld [vmem:[%s5950_s14 + $0x5f4] sm:$0xf0] }
 0x2d9   : > { %2610 = vmatmul.bf16.vlgmr.msra.gmra.mxu1 %v6149_v11  ;;  %v4596_v11 = vld [vmem:[%s5950_s14 + $0x730] sm:$0xf0]  ;;  %v4023_v48 = vor.u32 %v5049_v39, %v4020_v41  ;;  %v4443_v29 = vor.u32 %v5158_v7, %v4442_v19  ;;  %v4666_v37 = vld [vmem:[%s5950_s14 + $0x798] sm:$0xf] }
 0x2da   : > { %2635 = vmatpush.bf16.msra.mxu3 %v4467_v49  ;;  %2654 = vmatpush.bf16.msrb.mxu1 %v4183_v51  ;;  %v4599_v28 = vor.u32 %v5193_v21, %v4596_v11  ;;  %v5113_v42 = vld [vmem:[%s5950_s14 + $0x494] sm:$0xf]  ;;  %v5214_v38 = vld [vmem:[%s5950_s14 + $0x7b4] sm:$0xf0] }
 0x2db   : > { %2623 = vmatmul.bf16.vlgmr.msra.gmra.mxu2 %v6140_v5  ;;  %v5001_v5 = vld [vmem:[%s5950_s14 + $0x114] sm:$0xf]  ;;  %v4570_v19 = vld [vmem:[%s5950_s14 + $0x6d8] sm:$0xf] }
 0x2dc   : > { %2667 = vmatpush.bf16.msrb.mxu2 %v4439_v52  ;;  %2642 = vmatpush.bf16.msrb.mxu0 %v3895_v62  ;;  %v3831_v22 = vor.u32 %v5001_v5, %v3828_v17  ;;  %v4276_v43 = vld [vmem:[%s5950_s14 + $0x4b0] sm:$0xf0]  ;;  %v5030_v5 = vld [vmem:[%s5950_s14 + $0x1f4] sm:$0xf0]  ;;  %v2392_v21 = vpop.f32.mrf.mxu0 }
 0x2dd   : > { %2636 = vmatmul.bf16.vlgmr.msra.gmra.mxu3 %v6142_v6  ;;  %v4631_v6 = vor.u32 %v5201_v12, %v4628_v13  ;;  %v5177_v44 = vld [vmem:[%s5950_s14 + $0x694] sm:$0xf]  ;;  %v4279_v49 = vor.u32 %v5113_v42, %v4276_v43  ;;  %v4186_v17 = vld [vmem:[%s5950_s14 + $0x3d8] sm:$0xf] }
 0x2de   : > { %2680 = vmatpush.bf16.msrb.mxu3 %v4695_v56  ;;  %2655 = vmatpush.bf16.msrb.mxu1 %v4151_v63  ;;  %v4532_v45 = vld [vmem:[%s5950_s14 + $0x6b0] sm:$0xf0]  ;;  %v2416_v8 = vpop.f32.mrf.mxu2  ;;  %v2405_v25 = vpop.f32.mrf.mxu1  ;;  %v5190_v7 = vld [vmem:[%s5950_s14 + $0x6f4] sm:$0xf0] }
 0x2df   : > { %v4977_v50 = vld [vmem:[%s5950_s14 + $0x54] sm:$0xf]  ;;  %v4535_v54 = vor.u32 %v5177_v44, %v4532_v45  ;;  %v3866_v44 = vld [vmem:[%s5950_s14 + $0x158] sm:$0xf] }
 0x2e0   : > { %2668 = vmatpush.bf16.msrb.mxu2 %v4407_v0  ;;  %2643 = vmatpush.bf16.msrb.mxu0 %v3863_v14  ;;  %v3732_v51 = vld [vmem:[%s5950_s14 + $0x70] sm:$0xf0]  ;;  %v2417_v14 = vadd.f32 %v2416_v8, %v2404_v58  ;;  %v5014_v45 = vld [vmem:[%s5950_s14 + $0x174] sm:$0xf0] }
 0x2e1   : > { %v5041_v52 = vld [vmem:[%s5950_s14 + $0x254] sm:$0xf]  ;;  %v3735_v61 = vor.u32 %v4977_v50, %v3732_v51  ;;  %v4378_v50 = vld [vmem:[%s5950_s14 + $0x558] sm:$0xf] }
 0x2e2   : > { %2681 = vmatpush.bf16.msrb.mxu3 %v4663_v4  ;;  %2656 = vmatpush.bf16.msrb.mxu1 %v4119_v15  ;;  %v3988_v55 = vld [vmem:[%s5950_s14 + $0x270] sm:$0xf0]  ;;  %v2429_v15 = vpop.f32.mrf.mxu3  ;;  %v5142_v51 = vld [vmem:[%s5950_s14 + $0x574] sm:$0xf0] }
 0x2e3   : > { %v5105_v56 = vld [vmem:[%s5950_s14 + $0x454] sm:$0xf]  ;;  %v3991_v0 = vor.u32 %v5041_v52, %v3988_v55  ;;  %v6458_v20 = vadd.f32 %v2429_v15, %v2417_v14  ;;  %v6479_v52 = vld [vmem:[#allocation1 + $0x1b] sm:$0xff]  ;;  %v5206_v55 = vld [vmem:[%s5950_s14 + $0x774] sm:$0xf0] }
 0x2e4   : > { %2669 = vmatpush.bf16.msrb.mxu2 %v4375_v16  ;;  %2644 = vmatpush.bf16.msrb.mxu0 %v3831_v22  ;;  %v4244_v57 = vld [vmem:[%s5950_s14 + $0x470] sm:$0xf0]  ;;  %v3930_v16 = vld [vmem:[%s5950_s14 + $0x1d8] sm:$0xf] }
 0x2e5   : > { %v5169_v59 = vld [vmem:[%s5950_s14 + $0x654] sm:$0xf]  ;;  %v4247_v1 = vor.u32 %v5105_v56, %v4244_v57  ;;  %v3931_v27 = vor.u32 %v5030_v5, %v3930_v16  ;;  %v3867_v57 = vor.u32 %v5014_v45, %v3866_v44  ;;  %v3802_v14 = vld [vmem:[%s5950_s14 + $0xd8] sm:$0xf] }
 0x2e6   : > { %2682 = vmatpush.bf16.msrb.mxu3 %v4631_v6  ;;  %2657 = vmatpush.bf16.msrb.mxu1 %v4087_v24  ;;  %v4500_v60 = vld [vmem:[%s5950_s14 + $0x670] sm:$0xf0]  ;;  %v5094_v6 = vld [vmem:[%s5950_s14 + $0x3f4] sm:$0xf0]  ;;  %v2418_v39 = vpop.f32.mrf.mxu2 }
 0x2e7   : > { %v4969_v62 = vld [vmem:[%s5950_s14 + $0x14] sm:$0xf]  ;;  %v4503_v9 = vor.u32 %v5169_v59, %v4500_v60  ;;  %v4698_v24 = vld [vmem:[%s5950_s14 + $0x7d8] sm:$0xf]  ;;  %v4379_v59 = vor.u32 %v5142_v51, %v4378_v50 }
 0x2e8   : > { %2670 = vmatpush.bf16.msrb.mxu2 %v4343_v23  ;;  %2645 = vmatpush.bf16.msrb.mxu0 %v3799_v34  ;;  %v3700_v63 = vld [vmem:[%s5950_s14 + $0x30] sm:$0xf0]  ;;  %v5222_v23 = vld [vmem:[%s5950_s14 + $0x7f4] sm:$0xf0] }
 0x2e9   : > { %v5033_v2 = vld [vmem:[%s5950_s14 + $0x214] sm:$0xf]  ;;  %v3703_v18 = vor.u32 %v4969_v62, %v3700_v63  ;;  %v4699_v33 = vor.u32 %v5222_v23, %v4698_v24  ;;  %v5086_v34 = vld [vmem:[%s5950_s14 + $0x3b4] sm:$0xf0] }
 0x2ea   : > { %2683 = vmatpush.bf16.msrb.mxu3 %v4599_v28  ;;  %2658 = vmatpush.bf16.msrb.mxu1 %v4055_v35  ;;  %v3956_v3 = vld [vmem:[%s5950_s14 + $0x230] sm:$0xf0]  ;;  %v4187_v28 = vor.u32 %v5094_v6, %v4186_v17  ;;  %v4410_v35 = vld [vmem:[%s5950_s14 + $0x598] sm:$0xf]  ;;  %v2431_v41 = vpop.f32.mrf.mxu3  ;;  %v4155_v42 = vor.u32 %v5086_v34, %v4154_v32 }
 0x2eb   : > { %v5097_v4 = vld [vmem:[%s5950_s14 + $0x414] sm:$0xf]  ;;  %v3959_v11 = vor.u32 %v5033_v2, %v3956_v3  ;;  %v3834_v60 = vld [vmem:[%s5950_s14 + $0x118] sm:$0xf] }
 0x2ec   : > { %2671 = vmatpush.bf16.msrb.mxu2 %v4311_v36  ;;  %2646 = vmatpush.bf16.msrb.mxu0 %v3767_v46  ;;  %v4212_v10 = vld [vmem:[%s5950_s14 + $0x430] sm:$0xf0]  ;;  %v5150_v36 = vld [vmem:[%s5950_s14 + $0x5b4] sm:$0xf0] }
 0x2ed   : > { %v5161_v12 = vld [vmem:[%s5950_s14 + $0x614] sm:$0xf]  ;;  %v4215_v22 = vor.u32 %v5097_v4, %v4212_v10  ;;  %v4411_v43 = vor.u32 %v5150_v36, %v4410_v35  ;;  %v4122_v46 = vld [vmem:[%s5950_s14 + $0x358] sm:$0xf] }
 0x2ee   : > { %2684 = vmatpush.bf16.msrb.mxu3 %v4567_v40  ;;  %2659 = vmatpush.bf16.msrb.mxu1 %v4023_v48  ;;  %v4468_v13 = vld [vmem:[%s5950_s14 + $0x630] sm:$0xf0]  ;;  %v3899_v40 = vor.u32 %v5022_v31, %v3898_v30  ;;  %v4667_v48 = vor.u32 %v5214_v38, %v4666_v37  ;;  %v4090_v62 = vld [vmem:[%s5950_s14 + $0x318] sm:$0xf] }
 0x2ef   : > { %v4471_v26 = vor.u32 %v5161_v12, %v4468_v13  ;;  %v6487_v56 = vld [vmem:[#allocation1 + $0x9] sm:$0xff] }
 0x2f0   : > { %2672 = vmatpush.bf16.msrb.mxu2 %v4279_v49  ;;  %2647 = vmatpush.bf16.msrb.mxu0 %v3735_v61  ;;  %v5078_v49 = vld [vmem:[%s5950_s14 + $0x374] sm:$0xf0] }
 0x2f1   : > { %v4123_v58 = vor.u32 %v5078_v49, %v4122_v46  ;;  %v5006_v61 = vld [vmem:[%s5950_s14 + $0x134] sm:$0xf0] }
 0x2f2   : > { %2685 = vmatpush.bf16.msrb.mxu3 %v4535_v54  ;;  %2660 = vmatpush.bf16.msrb.mxu1 %v3991_v0  ;;  %v4634_v54 = vld [vmem:[%s5950_s14 + $0x758] sm:$0xf]  ;;  %v3835_v8 = vor.u32 %v5006_v61, %v3834_v60 }
 0x2f3   : > { %v4635_v63 = vor.u32 %v5206_v55, %v4634_v54  ;;  %v5070_v0 = vld [vmem:[%s5950_s14 + $0x334] sm:$0xf0] }
 0x2f4   : > { %2673 = vmatpush.bf16.msrb.mxu2 %v4247_v1  ;;  %2648 = vmatpush.bf16.msrb.mxu0 %v3703_v18  ;;  %v4346_v1 = vld [vmem:[%s5950_s14 + $0x518] sm:$0xf]  ;;  %v4091_v10 = vor.u32 %v5070_v0, %v4090_v62 }
 0x2f5   : > { %v5134_v2 = vld [vmem:[%s5950_s14 + $0x534] sm:$0xf0] }
 0x2f6   : > { %2686 = vmatpush.bf16.msrb.mxu3 %v4503_v9  ;;  %2661 = vmatpush.bf16.msrb.mxu1 %v3959_v11  ;;  %v4602_v3 = vld [vmem:[%s5950_s14 + $0x718] sm:$0xf]  ;;  %v6498_v9 = vpop.f32.mrf.mxu0  ;;  %v4347_v12 = vor.u32 %v5134_v2, %v4346_v1  ;;  %v6500_v13 = vpop.f32.mrf.mxu1  ;;  %v5026_v2 = vld [vmem:[%s5950_s14 + $0x1dc] sm:$0xf] }
 0x2f7   : > { %2649 = vmatmul.bf16.vlgmr.msrb.gmra.mxu0 %v6482_v53  ;;  %v5198_v4 = vld [vmem:[%s5950_s14 + $0x734] sm:$0xf0] }
 0x2f8   : > { %2674 = vmatpush.bf16.msrb.mxu2 %v4215_v22  ;;  %2693 = vmatpush.bf16.msra.mxu0 %v3931_v27  ;;  %v4998_v15 = vld [vmem:[%s5950_s14 + $0xf4] sm:$0xf0]  ;;  %v4603_v5 = vor.u32 %v5198_v4, %v4602_v3  ;;  %v4571_v27 = vor.u32 %v5190_v7, %v4570_v19  ;;  %v3932_v3 = vld [vmem:[%s5950_s14 + $0x1f8] sm:$0xf0] }
 0x2f9   : > { %2662 = vmatmul.bf16.vlgmr.msrb.gmra.mxu1 %v6487_v56  ;;  %v4058_v16 = vld [vmem:[%s5950_s14 + $0x2d8] sm:$0xf]  ;;  %v3803_v21 = vor.u32 %v4998_v15, %v3802_v14  ;;  %v5090_v4 = vld [vmem:[%s5950_s14 + $0x3dc] sm:$0xf] }
 0x2fa   : > { %2687 = vmatpush.bf16.msrb.mxu3 %v4471_v26  ;;  %2706 = vmatpush.bf16.msra.mxu1 %v4187_v28  ;;  %v5062_v17 = vld [vmem:[%s5950_s14 + $0x2f4] sm:$0xf0]  ;;  %v4444_v14 = vld [vmem:[%s5950_s14 + $0x5f8] sm:$0xf0] }
 0x2fb   : > { %2675 = vmatmul.bf16.vlgmr.msrb.gmra.mxu2 %v6473_v47  ;;  %v4314_v18 = vld [vmem:[%s5950_s14 + $0x4d8] sm:$0xf]  ;;  %v4059_v11 = vor.u32 %v5062_v17, %v4058_v16  ;;  %v4700_v17 = vld [vmem:[%s5950_s14 + $0x7f8] sm:$0xf0] }
 0x2fc   : > { %2719 = vmatpush.bf16.msra.mxu2 %v4443_v29  ;;  %2694 = vmatpush.bf16.msra.mxu0 %v3899_v40  ;;  %v5126_v6 = vld [vmem:[%s5950_s14 + $0x4f4] sm:$0xf0] }
 0x2fd   : > { %2688 = vmatmul.bf16.vlgmr.msrb.gmra.mxu3 %v6479_v52  ;;  %v4315_v22 = vor.u32 %v5126_v6, %v4314_v18  ;;  %v3770_v23 = vld [vmem:[%s5950_s14 + $0x98] sm:$0xf]  ;;  %v3935_v6 = vor.u32 %v5026_v2, %v3932_v3 }
 0x2fe   : > { %2732 = vmatpush.bf16.msra.mxu3 %v4699_v33  ;;  %2707 = vmatpush.bf16.msra.mxu1 %v4155_v42  ;;  %v6510_v24 = vpop.f32.mrf.mxu2  ;;  %v4990_v25 = vld [vmem:[%s5950_s14 + $0xb4] sm:$0xf0]  ;;  %v2444_v35 = vpop.f32.mrf.mxu0 }
 0x2ff   : > { %v4026_v26 = vld [vmem:[%s5950_s14 + $0x298] sm:$0xf]  ;;  %v3771_v34 = vor.u32 %v4990_v25, %v3770_v23  ;;  %v2457_v41 = vpop.f32.mrf.mxu1  ;;  %v4156_v25 = vld [vmem:[%s5950_s14 + $0x3b8] sm:$0xf0] }
 0x300   : > { %2720 = vmatpush.bf16.msra.mxu2 %v4411_v43  ;;  %2695 = vmatpush.bf16.msra.mxu0 %v3867_v57  ;;  %v6515_v28 = vpop.f32.mrf.mxu3  ;;  %v5054_v29 = vld [vmem:[%s5950_s14 + $0x2b4] sm:$0xf0]  ;;  %v3868_v35 = vld [vmem:[%s5950_s14 + $0x178] sm:$0xf0] }
 0x301   : > { %v4282_v30 = vld [vmem:[%s5950_s14 + $0x498] sm:$0xf]  ;;  %v4027_v36 = vor.u32 %v5054_v29, %v4026_v26  ;;  %v5146_v26 = vld [vmem:[%s5950_s14 + $0x59c] sm:$0xf] }
 0x302   : > { %2733 = vmatpush.bf16.msra.mxu3 %v4667_v48  ;;  %2708 = vmatpush.bf16.msra.mxu1 %v4123_v58  ;;  %v5118_v31 = vld [vmem:[%s5950_s14 + $0x4b4] sm:$0xf0]  ;;  %v5210_v29 = vld [vmem:[%s5950_s14 + $0x79c] sm:$0xf] }
 0x303   : > { %v4538_v32 = vld [vmem:[%s5950_s14 + $0x698] sm:$0xf]  ;;  %v4283_v37 = vor.u32 %v5118_v31, %v4282_v30  ;;  %v4668_v30 = vld [vmem:[%s5950_s14 + $0x7b8] sm:$0xf0] }
 0x304   : > { %2721 = vmatpush.bf16.msra.mxu2 %v4379_v59  ;;  %2696 = vmatpush.bf16.msra.mxu0 %v3835_v8  ;;  %v5182_v33 = vld [vmem:[%s5950_s14 + $0x6b4] sm:$0xf0]  ;;  %v5202_v41 = vld [vmem:[%s5950_s14 + $0x75c] sm:$0xf] }
 0x305   : > { %v3738_v38 = vld [vmem:[%s5950_s14 + $0x58] sm:$0xf]  ;;  %v4539_v42 = vor.u32 %v5182_v33, %v4538_v32 }
 0x306   : > { %2734 = vmatpush.bf16.msra.mxu3 %v4635_v63  ;;  %2709 = vmatpush.bf16.msra.mxu1 %v4091_v10  ;;  %v4982_v39 = vld [vmem:[%s5950_s14 + $0x74] sm:$0xf0]  ;;  %v2470_v60 = vpop.f32.mrf.mxu2  ;;  %v4188_v10 = vld [vmem:[%s5950_s14 + $0x3f8] sm:$0xf0] }
 0x307   : > { %v3994_v40 = vld [vmem:[%s5950_s14 + $0x258] sm:$0xf]  ;;  %v3739_v49 = vor.u32 %v4982_v39, %v3738_v38  ;;  %v4191_v19 = vor.u32 %v5090_v4, %v4188_v10  ;;  %v4124_v38 = vld [vmem:[%s5950_s14 + $0x378] sm:$0xf0] }
 0x308   : > { %2722 = vmatpush.bf16.msra.mxu2 %v4347_v12  ;;  %2697 = vmatpush.bf16.msra.mxu0 %v3803_v21  ;;  %v5046_v43 = vld [vmem:[%s5950_s14 + $0x274] sm:$0xf0]  ;;  %v2483_v1 = vpop.f32.mrf.mxu3  ;;  %v5154_v12 = vld [vmem:[%s5950_s14 + $0x5dc] sm:$0xf] }
 0x309   : > { %v4250_v44 = vld [vmem:[%s5950_s14 + $0x458] sm:$0xf]  ;;  %v3995_v54 = vor.u32 %v5046_v43, %v3994_v40  ;;  %v4447_v7 = vor.u32 %v5154_v12, %v4444_v14  ;;  %v5018_v21 = vld [vmem:[%s5950_s14 + $0x19c] sm:$0xf] }
 0x30a   : > { %2735 = vmatpush.bf16.msra.mxu3 %v4603_v5  ;;  %2710 = vmatpush.bf16.msra.mxu1 %v4059_v11  ;;  %v5110_v45 = vld [vmem:[%s5950_s14 + $0x474] sm:$0xf0]  ;;  %v5218_v5 = vld [vmem:[%s5950_s14 + $0x7dc] sm:$0xf] }
 0x30b   : > { %v4506_v46 = vld [vmem:[%s5950_s14 + $0x658] sm:$0xf]  ;;  %v4251_v55 = vor.u32 %v5110_v45, %v4250_v44  ;;  %v3900_v11 = vld [vmem:[%s5950_s14 + $0x1b8] sm:$0xf0]  ;;  %v4703_v23 = vor.u32 %v5218_v5, %v4700_v17 }
 0x30c   : > { %2723 = vmatpush.bf16.msra.mxu2 %v4315_v22  ;;  %v5174_v48 = vld [vmem:[%s5950_s14 + $0x674] sm:$0xf0]  ;;  %2698 = vmatpush.bf16.msra.mxu0 %v3771_v34  ;;  %v5082_v22 = vld [vmem:[%s5950_s14 + $0x39c] sm:$0xf]  ;;  %v3903_v31 = vor.u32 %v5018_v21, %v3900_v11 }
 0x30d   : > { %v3706_v50 = vld [vmem:[%s5950_s14 + $0x18] sm:$0xf]  ;;  %v4507_v61 = vor.u32 %v5174_v48, %v4506_v46  ;;  %v4159_v32 = vor.u32 %v5082_v22, %v4156_v25  ;;  %v5010_v34 = vld [vmem:[%s5950_s14 + $0x15c] sm:$0xf] }
 0x30e   : > { %2736 = vmatpush.bf16.msra.mxu3 %v4571_v27  ;;  %v4974_v51 = vld [vmem:[%s5950_s14 + $0x34] sm:$0xf0]  ;;  %2711 = vmatpush.bf16.msra.mxu1 %v4027_v36  ;;  %v4412_v27 = vld [vmem:[%s5950_s14 + $0x5b8] sm:$0xf0]  ;;  %v3871_v43 = vor.u32 %v5010_v34, %v3868_v35 }
 0x30f   : > { %v3962_v57 = vld [vmem:[%s5950_s14 + $0x218] sm:$0xf]  ;;  %v3707_v8 = vor.u32 %v4974_v51, %v3706_v50  ;;  %v4415_v33 = vor.u32 %v5146_v26, %v4412_v27  ;;  %v5074_v36 = vld [vmem:[%s5950_s14 + $0x35c] sm:$0xf] }
 0x310   : > { %2724 = vmatpush.bf16.msra.mxu2 %v4283_v37  ;;  %v5038_v58 = vld [vmem:[%s5950_s14 + $0x234] sm:$0xf0]  ;;  %2699 = vmatpush.bf16.msra.mxu0 %v3739_v49  ;;  %v4671_v37 = vor.u32 %v5210_v29, %v4668_v30  ;;  %v5138_v39 = vld [vmem:[%s5950_s14 + $0x55c] sm:$0xf]  ;;  %v4127_v44 = vor.u32 %v5074_v36, %v4124_v38 }
 0x311   : > { %v4218_v59 = vld [vmem:[%s5950_s14 + $0x418] sm:$0xf]  ;;  %v3963_v15 = vor.u32 %v5038_v58, %v3962_v57  ;;  %v4380_v40 = vld [vmem:[%s5950_s14 + $0x578] sm:$0xf0] }
 0x312   : > { %2737 = vmatpush.bf16.msra.mxu3 %v4539_v42  ;;  %v5102_v62 = vld [vmem:[%s5950_s14 + $0x434] sm:$0xf0]  ;;  %2712 = vmatpush.bf16.msra.mxu1 %v3995_v54  ;;  %v4636_v42 = vld [vmem:[%s5950_s14 + $0x778] sm:$0xf0]  ;;  %v4383_v45 = vor.u32 %v5138_v39, %v4380_v40 }
 0x313   : > { %v4474_v63 = vld [vmem:[%s5950_s14 + $0x618] sm:$0xf]  ;;  %v4219_v16 = vor.u32 %v5102_v62, %v4218_v59  ;;  %v5002_v46 = vld [vmem:[%s5950_s14 + $0x11c] sm:$0xf]  ;;  %v4639_v50 = vor.u32 %v5202_v41, %v4636_v42 }
 0x314   : > { %v5166_v0 = vld [vmem:[%s5950_s14 + $0x634] sm:$0xf0]  ;;  %2725 = vmatpush.bf16.msra.mxu2 %v4251_v55  ;;  %2700 = vmatpush.bf16.msra.mxu0 %v3707_v8  ;;  %v3836_v48 = vld [vmem:[%s5950_s14 + $0x138] sm:$0xf0]  ;;  %v6574_v60 = vpop.f32.mrf.mxu0 }
 0x315   : > { %v4475_v18 = vor.u32 %v5166_v0, %v4474_v63  ;;  %v5066_v49 = vld [vmem:[%s5950_s14 + $0x31c] sm:$0xf]  ;;  %v3839_v59 = vor.u32 %v5002_v46, %v3836_v48 }
 0x316   : > { %2738 = vmatpush.bf16.msra.mxu3 %v4507_v61  ;;  %2713 = vmatpush.bf16.msra.mxu1 %v3963_v15  ;;  %v4092_v51 = vld [vmem:[%s5950_s14 + $0x338] sm:$0xf0]  ;;  %v6579_v2 = vpop.f32.mrf.mxu1 }
 0x317   : > { %2701 = vmatmul.bf16.vlgmr.msra.gmra.mxu0 %v6482_v53  ;;  %v5130_v54 = vld [vmem:[%s5950_s14 + $0x51c] sm:$0xf]  ;;  %v4095_v61 = vor.u32 %v5066_v49, %v4092_v51 }
 0x318   : > { %2726 = vmatpush.bf16.msra.mxu2 %v4219_v16  ;;  %2745 = vmatpush.bf16.msrb.mxu0 %v3935_v6  ;;  %v4348_v55 = vld [vmem:[%s5950_s14 + $0x538] sm:$0xf0] }
 0x319   : > { %2714 = vmatmul.bf16.vlgmr.msra.gmra.mxu1 %v6487_v56  ;;  %v5194_v57 = vld [vmem:[%s5950_s14 + $0x71c] sm:$0xf]  ;;  %v4351_v62 = vor.u32 %v5130_v54, %v4348_v55 }
 0x31a   : > { %2739 = vmatpush.bf16.msra.mxu3 %v4475_v18  ;;  %2758 = vmatpush.bf16.msrb.mxu1 %v4191_v19  ;;  %v4604_v58 = vld [vmem:[%s5950_s14 + $0x738] sm:$0xf0] }
 0x31b   : > { %2727 = vmatmul.bf16.vlgmr.msra.gmra.mxu2 %v6473_v47  ;;  %v4994_v63 = vld [vmem:[%s5950_s14 + $0xdc] sm:$0xf]  ;;  %v4607_v3 = vor.u32 %v5194_v57, %v4604_v58 }
 0x31c   : > { %2771 = vmatpush.bf16.msrb.mxu2 %v4447_v7  ;;  %2746 = vmatpush.bf16.msrb.mxu0 %v3903_v31  ;;  %v3804_v0 = vld [vmem:[%s5950_s14 + $0xf8] sm:$0xf0]  ;;  %v2496_v29 = vpop.f32.mrf.mxu0 }
 0x31d   : > { %2740 = vmatmul.bf16.vlgmr.msra.gmra.mxu3 %v6479_v52  ;;  %v5058_v1 = vld [vmem:[%s5950_s14 + $0x2dc] sm:$0xf]  ;;  %v3807_v15 = vor.u32 %v4994_v63, %v3804_v0 }
 0x31e   : > { %2784 = vmatpush.bf16.msrb.mxu3 %v4703_v23  ;;  %2759 = vmatpush.bf16.msrb.mxu1 %v4159_v32  ;;  %v4060_v4 = vld [vmem:[%s5950_s14 + $0x2f8] sm:$0xf0]  ;;  %v6589_v19 = vpop.f32.mrf.mxu2  ;;  %v2509_v35 = vpop.f32.mrf.mxu1 }
 0x31f   : > { %v5122_v8 = vld [vmem:[%s5950_s14 + $0x4dc] sm:$0xf]  ;;  %v4063_v16 = vor.u32 %v5058_v1, %v4060_v4  ;;  %v2456_v1 = vadd.f32 %v6500_v13, %v6498_v9 }
 0x320   : > { %2772 = vmatpush.bf16.msrb.mxu2 %v4415_v33  ;;  %2747 = vmatpush.bf16.msrb.mxu0 %v3871_v43  ;;  %v4316_v10 = vld [vmem:[%s5950_s14 + $0x4f8] sm:$0xf0]  ;;  %v6594_v23 = vpop.f32.mrf.mxu3 }
 0x321   : > { %v5186_v12 = vld [vmem:[%s5950_s14 + $0x6dc] sm:$0xf]  ;;  %v4319_v5 = vor.u32 %v5122_v8, %v4316_v10  ;;  %v2469_v4 = vadd.f32 %v6510_v24, %v2456_v1 }
 0x322   : > { %2785 = vmatpush.bf16.msrb.mxu3 %v4671_v37  ;;  %2760 = vmatpush.bf16.msrb.mxu1 %v4127_v44  ;;  %v4572_v14 = vld [vmem:[%s5950_s14 + $0x6f8] sm:$0xf0] }
 0x323   : > { %v4986_v17 = vld [vmem:[%s5950_s14 + $0x9c] sm:$0xf]  ;;  %v4575_v7 = vor.u32 %v5186_v12, %v4572_v14 }
 0x324   : > { %2773 = vmatpush.bf16.msrb.mxu2 %v4383_v45  ;;  %2748 = vmatpush.bf16.msrb.mxu0 %v3839_v59  ;;  %v3772_v18 = vld [vmem:[%s5950_s14 + $0xb8] sm:$0xf0] }
 0x325   : > { %v5050_v6 = vld [vmem:[%s5950_s14 + $0x29c] sm:$0xf]  ;;  %v3775_v27 = vor.u32 %v4986_v17, %v3772_v18 }
 0x326   : > { %2786 = vmatpush.bf16.msrb.mxu3 %v4639_v50  ;;  %2761 = vmatpush.bf16.msrb.mxu1 %v4095_v61  ;;  %v4028_v21 = vld [vmem:[%s5950_s14 + $0x2b8] sm:$0xf0]  ;;  %v2522_v49 = vpop.f32.mrf.mxu2 }
 0x327   : > { %v5114_v11 = vld [vmem:[%s5950_s14 + $0x49c] sm:$0xf]  ;;  %v4031_v30 = vor.u32 %v5050_v6, %v4028_v21 }
 0x328   : > { %2774 = vmatpush.bf16.msrb.mxu2 %v4351_v62  ;;  %v4284_v22 = vld [vmem:[%s5950_s14 + $0x4b8] sm:$0xf0]  ;;  %2749 = vmatpush.bf16.msrb.mxu0 %v3807_v15  ;;  %v2535_v57 = vpop.f32.mrf.mxu3 }
 0x329   : > { %v5178_v25 = vld [vmem:[%s5950_s14 + $0x69c] sm:$0xf]  ;;  %v4287_v31 = vor.u32 %v5114_v11, %v4284_v22 }
 0x32a   : > { %2787 = vmatpush.bf16.msrb.mxu3 %v4607_v3  ;;  %v4540_v26 = vld [vmem:[%s5950_s14 + $0x6b8] sm:$0xf0]  ;;  %2762 = vmatpush.bf16.msrb.mxu1 %v4063_v16  ;;  %v2508_v3 = vadd.f32 %v6579_v2, %v6574_v60  ;;  %v830_v2 = vld [vmem:[#allocation3] sm:$0xff] }
 0x32b   : > { %v4978_v32 = vld [vmem:[%s5950_s14 + $0x5c] sm:$0xf]  ;;  %v4543_v36 = vor.u32 %v5178_v25, %v4540_v26 }
 0x32c   : > { %2775 = vmatpush.bf16.msrb.mxu2 %v4319_v5  ;;  %v3740_v33 = vld [vmem:[%s5950_s14 + $0x78] sm:$0xf0]  ;;  %2750 = vmatpush.bf16.msrb.mxu0 %v3775_v27  ;;  %v2521_v12 = vadd.f32 %v6589_v19, %v2508_v3 }
 0x32d   : > { %v5042_v34 = vld [vmem:[%s5950_s14 + $0x25c] sm:$0xf]  ;;  %v3743_v42 = vor.u32 %v4978_v32, %v3740_v33 }
 0x32e   : > { %2788 = vmatpush.bf16.msrb.mxu3 %v4575_v7  ;;  %v3996_v37 = vld [vmem:[%s5950_s14 + $0x278] sm:$0xf0]  ;;  %2763 = vmatpush.bf16.msrb.mxu1 %v4031_v30 }
 0x32f   : > { %v5106_v38 = vld [vmem:[%s5950_s14 + $0x45c] sm:$0xf]  ;;  %v3999_v43 = vor.u32 %v5042_v34, %v3996_v37 }
 0x330   : > { %v4252_v39 = vld [vmem:[%s5950_s14 + $0x478] sm:$0xf0]  ;;  %2776 = vmatpush.bf16.msrb.mxu2 %v4287_v31  ;;  %2751 = vmatpush.bf16.msrb.mxu0 %v3743_v42 }
 0x331   : > { %v5170_v40 = vld [vmem:[%s5950_s14 + $0x65c] sm:$0xf]  ;;  %v4255_v44 = vor.u32 %v5106_v38, %v4252_v39 }
 0x332   : > { %v4508_v41 = vld [vmem:[%s5950_s14 + $0x678] sm:$0xf0]  ;;  %2789 = vmatpush.bf16.msrb.mxu3 %v4543_v36  ;;  %2764 = vmatpush.bf16.msrb.mxu1 %v3999_v43 }
 0x333   : > { %v4970_v45 = vld [vmem:[%s5950_s14 + $0x1c] sm:$0xf]  ;;  %v4511_v50 = vor.u32 %v5170_v40, %v4508_v41 }
 0x334   : > { %v3708_v46 = vld [vmem:[%s5950_s14 + $0x38] sm:$0xf0]  ;;  %2777 = vmatpush.bf16.msrb.mxu2 %v4255_v44  ;;  %v2546_v8 = vpop.f32.mrf.mxu0 }
 0x335   : > { %v5034_v48 = vld [vmem:[%s5950_s14 + $0x21c] sm:$0xf]  ;;  %v3711_v61 = vor.u32 %v4970_v45, %v3708_v46 }
 0x336   : > { %v3964_v51 = vld [vmem:[%s5950_s14 + $0x238] sm:$0xf0]  ;;  %2790 = vmatpush.bf16.msrb.mxu3 %v4511_v50  ;;  %v2559_v10 = vpop.f32.mrf.mxu1 }
 0x337   : > { %v5098_v54 = vld [vmem:[%s5950_s14 + $0x41c] sm:$0xf]  ;;  %v3967_v62 = vor.u32 %v5034_v48, %v3964_v51  ;;  %2752 = vmatpush.bf16.msrb.mxu0 %v3711_v61  ;;  %v2560_v14 = vadd.f32 %v2559_v10, %v2546_v8 }
 0x338   : > { %v4220_v55 = vld [vmem:[%s5950_s14 + $0x438] sm:$0xf0] }
 0x339   : > { %v5162_v58 = vld [vmem:[%s5950_s14 + $0x61c] sm:$0xf]  ;;  %v4223_v63 = vor.u32 %v5098_v54, %v4220_v55  ;;  %2765 = vmatpush.bf16.msrb.mxu1 %v3967_v62 }
 0x33a   : > { %v4476_v59 = vld [vmem:[%s5950_s14 + $0x638] sm:$0xf0]  ;;  %2753 = vmatmul.bf16.vlgmr.msrb.gmra.mxu0 %v6482_v53  ;;  %v2482_v53 = vadd.f32 %v6515_v28, %v2469_v4 }
 0x33b   : > { %v4479_v0 = vor.u32 %v5162_v58, %v4476_v59  ;;  %2778 = vmatpush.bf16.msrb.mxu2 %v4223_v63 }
 0x33c   : > { %2766 = vmatmul.bf16.vlgmr.msrb.gmra.mxu1 %v6487_v56  ;;  %v2805_v16 = vrot.slane %v2482_v53, 6  ;;  %v2548_v9 = vpop.f32.mrf.mxu0 }
 0x33d   : > { %2791 = vmatpush.bf16.msrb.mxu3 %v4479_v0 }
 0x33e   : > { %2779 = vmatmul.bf16.vlgmr.msrb.gmra.mxu2 %v6473_v47  ;;  %v2572_v56 = vpop.f32.mrf.mxu2  ;;  %v2534_v47 = vadd.f32 %v6594_v23, %v2521_v12  ;;  %v2561_v13 = vpop.f32.mrf.mxu1  ;;  %v2812_v17 = vsel %vm2811_vm2, %v6458_v20, %v2805_v16 }
 0x33f   : > { %v2573_v15 = vadd.f32 %v2572_v56, %v2560_v14  ;;  %v831_v14 = vld [vmem:[#allocation3 + $0x8] sm:$0xff] }
 0x340   : > { %2792 = vmatmul.bf16.vlgmr.msrb.gmra.mxu3 %v6479_v52  ;;  %v2585_v52 = vpop.f32.mrf.mxu3  ;;  %v2806_v60 = vrot.slane %v2534_v47, 4 }
 0x341   : > { %v2586_v5 = vadd.f32 %v2585_v52, %v2573_v15 }
 0x343   : > { %v2807_v24 = vrot.slane %v2586_v5, 2 }
 0x345   : > { %v2814_v28 = vsel %vm2813_vm4, %v2806_v60, %v2807_v24 }
 0x346   : > { %v2816_v18 = vsel %vm2815_vm8, %v2812_v17, %v2814_v28  ;;  %v2574_v6 = vpop.f32.mrf.mxu2 }
 0x347   : > { %v2822_v19 = vadd.f32 %v2816_v18, %v830_v2 }
 0x348   : > { %v2587_v7 = vpop.f32.mrf.mxu3 }
 0x349   : > { %2824 = vst [vmem:[#allocation3] sm:$0xff] %v2822_v19 }
 0x354   : > { %v2598_v21 = vpop.f32.mrf.mxu0 }
 0x356   : > { %v2611_v11 = vpop.f32.mrf.mxu1 }
 0x357   : > { %v2612_v22 = vadd.f32 %v2611_v11, %v2598_v21 }
 0x35c   : > { %v2600_v29 = vpop.f32.mrf.mxu0 }
 0x35e   : > { %v2624_v23 = vpop.f32.mrf.mxu2  ;;  %v2613_v30 = vpop.f32.mrf.mxu1 }
 0x35f   : > { %v2625_v25 = vadd.f32 %v2624_v23, %v2612_v22 }
 0x360   : > { %v2637_v26 = vpop.f32.mrf.mxu3 }
 0x361   : > { %v2638_v27 = vadd.f32 %v2637_v26, %v2625_v25 }
 0x366   : > { %v2626_v31 = vpop.f32.mrf.mxu2 }
 0x368   : > { %v2639_v32 = vpop.f32.mrf.mxu3 }
 0x374   : > { %v2650_v20 = vpop.f32.mrf.mxu0 }
 0x376   : > { %v2663_v33 = vpop.f32.mrf.mxu1 }
 0x377   : > { %v2664_v49 = vadd.f32 %v2663_v33, %v2650_v20 }
 0x37c   : > { %v2652_v36 = vpop.f32.mrf.mxu0 }
 0x37e   : > { %v2676_v34 = vpop.f32.mrf.mxu2  ;;  %v2665_v37 = vpop.f32.mrf.mxu1 }
 0x37f   : > { %v2677_v55 = vadd.f32 %v2676_v34, %v2664_v49 }
 0x380   : > { %v2689_v35 = vpop.f32.mrf.mxu3 }
 0x381   : > { %v2690_v59 = vadd.f32 %v2689_v35, %v2677_v55 }
 0x383   : > { %v2808_v4 = vrot.slane %v2690_v59, 6 }
 0x385   : > { %v2817_v53 = vsel %vm2811_vm2, %v2638_v27, %v2808_v4 }
 0x386   : > { %v2678_v38 = vpop.f32.mrf.mxu2 }
 0x388   : > { %v2691_v39 = vpop.f32.mrf.mxu3 }
 0x394   : > { %v2702_v40 = vpop.f32.mrf.mxu0 }
 0x396   : > { %v2715_v41 = vpop.f32.mrf.mxu1 }
 0x397   : > { %v2716_v50 = vadd.f32 %v2715_v41, %v2702_v40 }
 0x39c   : > { %v2704_v44 = vpop.f32.mrf.mxu0 }
 0x39e   : > { %v2728_v42 = vpop.f32.mrf.mxu2  ;;  %v2717_v45 = vpop.f32.mrf.mxu1 }
 0x39f   : > { %v2729_v57 = vadd.f32 %v2728_v42, %v2716_v50 }
 0x3a0   : > { %v2741_v43 = vpop.f32.mrf.mxu3 }
 0x3a1   : > { %v2742_v62 = vadd.f32 %v2741_v43, %v2729_v57 }
 0x3a3   : > { %v2809_v10 = vrot.slane %v2742_v62, 4 }
 0x3a6   : > { %v2730_v46 = vpop.f32.mrf.mxu2 }
 0x3a8   : > { %v2743_v48 = vpop.f32.mrf.mxu3 }
 0x3b7   : > { %v2754_v51 = vpop.f32.mrf.mxu0 }
 0x3b9   : > { %v2767_v54 = vpop.f32.mrf.mxu1 }
 0x3ba   : > { %v2768_v58 = vadd.f32 %v2767_v54, %v2754_v51 }
 0x3bf   : > { %v2756_v1 = vpop.f32.mrf.mxu0 }
 0x3c1   : > { %v2780_v61 = vpop.f32.mrf.mxu2  ;;  %v2769_v3 = vpop.f32.mrf.mxu1 }
 0x3c2   : > { %v2781_v63 = vadd.f32 %v2780_v61, %v2768_v58 }
 0x3c3   : > { %v2793_v0 = vpop.f32.mrf.mxu3 }
 0x3c4   : > { %v2794_v8 = vadd.f32 %v2793_v0, %v2781_v63 }
 0x3c6   : > { %v2810_v12 = vrot.slane %v2794_v8, 2 }
 0x3c8   : > { %v2818_v56 = vsel %vm2813_vm4, %v2809_v10, %v2810_v12  ;;  %2829 = sbr.rel (%p4704_p1) target bundleno = 1180 (0x49c), region = 96 }
 0x3c9   : > { %v2819_v47 = vsel %vm2815_vm8, %v2817_v53, %v2818_v56  ;;  %v2782_v15 = vpop.f32.mrf.mxu2 }
 0x3ca   : > { %v2823_v52 = vadd.f32 %v2819_v47, %v831_v14 }
 0x3cb   : > { %v2795_v16 = vpop.f32.mrf.mxu3 }
 0x3cc   : > { %2825 = vst [vmem:[#allocation3 + $0x8] sm:$0xff] %v2823_v52 }
 0x3cd   : > { %v5230_v5 = vld [vmem:[%s6856_s7 + $0x38] sm:$0xff]  ;;  %v5229_v24 = vld [vmem:[%s6856_s7 + $0x30] sm:$0xff]  ;;  %v5228_v18 = vld [vmem:[%s6856_s7 + $0x28] sm:$0xff]  ;;  %vm3509_vm13 = vcmask 74752  }
 0x3ce   : > { %v5238_v9 = vld [vmem:[%s6856_s7 + $0x78] sm:$0xff]  ;;  %3405 = vmatpush.bf16.msra.mxu0 %v5230_v5  ;;  %v5237_v2 = vld [vmem:[%s6856_s7 + $0x70] sm:$0xff]  ;;  %v5236_v6 = vld [vmem:[%s6856_s7 + $0x68] sm:$0xff] }
 0x3cf   : > { %v5246_v13 = vld [vmem:[%s6856_s7 + $0xb8] sm:$0xff]  ;;  %3418 = vmatpush.bf16.msra.mxu1 %v5238_v9  ;;  %v5245_v17 = vld [vmem:[%s6856_s7 + $0xb0] sm:$0xff]  ;;  %v5244_v19 = vld [vmem:[%s6856_s7 + $0xa8] sm:$0xff] }
 0x3d0   : > { %v5254_v60 = vld [vmem:[%s6856_s7 + $0xf8] sm:$0xff]  ;;  %3431 = vmatpush.bf16.msra.mxu2 %v5246_v13  ;;  %v5253_v28 = vld [vmem:[%s6856_s7 + $0xf0] sm:$0xff]  ;;  %v5252_v7 = vld [vmem:[%s6856_s7 + $0xe8] sm:$0xff] }
 0x3d1   : > { %3444 = vmatpush.bf16.msra.mxu3 %v5254_v60  ;;  %v5227_v21 = vld [vmem:[%s6856_s7 + $0x20] sm:$0xff]  ;;  %v2832_v25 = vld [vmem:[#allocation15] sm:$0xff]  ;;  %v5224_v61 = vld [vmem:[%s6856_s7 + $0x8] sm:$0xff] }
 0x3d2   : > { %3406 = vmatpush.bf16.msra.mxu0 %v5229_v24  ;;  %v5235_v11 = vld [vmem:[%s6856_s7 + $0x60] sm:$0xff]  ;;  %v5226_v26 = vld [vmem:[%s6856_s7 + $0x18] sm:$0xff]  ;;  %v2834_v29 = vperm.slane %v2832_v25, 0  ;;  %v2835_v30 = vperm.slane %v2832_v25, 1  ;;  %v2836_v31 = vperm.slane %v2832_v25, 2  ;;  %v2837_v32 = vperm.slane %v2832_v25, 3 }
 0x3d3   : > { %3419 = vmatpush.bf16.msra.mxu1 %v5237_v2  ;;  %v5243_v22 = vld [vmem:[%s6856_s7 + $0xa0] sm:$0xff]  ;;  %v5234_v27 = vld [vmem:[%s6856_s7 + $0x58] sm:$0xff]  ;;  %v2838_v34 = vperm.slane %v2832_v25, 4  ;;  %v2839_v35 = vperm.slane %v2832_v25, 5  ;;  %v2840_v36 = vperm.slane %v2832_v25, 6  ;;  %v2841_v41 = vperm.slane %v2832_v25, 7 }
 0x3d4   : > { %3432 = vmatpush.bf16.msra.mxu2 %v5245_v17  ;;  %v5251_v23 = vld [vmem:[%s6856_s7 + $0xe0] sm:$0xff]  ;;  %v5242_v20 = vld [vmem:[%s6856_s7 + $0x98] sm:$0xff]  ;;  %v2842_v37 = vrot.slane %v2835_v30, 6  ;;  %v2843_v38 = vrot.slane %v2836_v31, 4  ;;  %v2844_v39 = vrot.slane %v2837_v32, 2  ;;  %v5225_v44 = vld [vmem:[%s6856_s7 + $0x10] sm:$0xff] }
 0x3d5   : > { %3445 = vmatpush.bf16.msra.mxu3 %v5253_v28  ;;  %v5250_v33 = vld [vmem:[%s6856_s7 + $0xd8] sm:$0xff]  ;;  %v2845_v42 = vrot.slane %v2839_v35, 6  ;;  %v2846_v43 = vrot.slane %v2840_v36, 4  ;;  %v5233_v45 = vld [vmem:[%s6856_s7 + $0x50] sm:$0xff]  ;;  %v2847_v54 = vrot.slane %v2841_v41, 2  ;;  %v2831_v58 = vld [vmem:[#allocation3 + $0x8] sm:$0xff] }
 0x3d6   : > { %3407 = vmatpush.bf16.msra.mxu0 %v5228_v18  ;;  %v2830_v40 = vld [vmem:[#allocation3] sm:$0xff]  ;;  %v2848_v46 = vsel %vm2811_vm2, %v2834_v29, %v2842_v37  ;;  %v2849_v48 = vsel %vm2813_vm4, %v2843_v38, %v2844_v39  ;;  %v5241_v49 = vld [vmem:[%s6856_s7 + $0x90] sm:$0xff]  ;;  %v5232_v62 = vld [vmem:[%s6856_s7 + $0x48] sm:$0xff] }
 0x3d7   : > { %3420 = vmatpush.bf16.msra.mxu1 %v5236_v6  ;;  %v5249_v50 = vld [vmem:[%s6856_s7 + $0xd0] sm:$0xff]  ;;  %v2850_v51 = vsel %vm2815_vm8, %v2848_v46, %v2849_v48  ;;  %v2851_v55 = vsel %vm2811_vm2, %v2838_v34, %v2845_v42  ;;  %v2852_v59 = vsel %vm2813_vm4, %v2846_v43, %v2847_v54  ;;  %v5240_v1 = vld [vmem:[%s6856_s7 + $0x88] sm:$0xff]  ;;  %v5223_v10 = vld [vmem:[%s6856_s7] sm:$0xff] }
 0x3d8   : > { %3433 = vmatpush.bf16.msra.mxu2 %v5244_v19  ;;  %v2856_v57 = vadd.f32 %v2850_v51, %v2830_v40  ;;  %v2853_v0 = vsel %vm2815_vm8, %v2851_v55, %v2852_v59  ;;  %v5248_v3 = vld [vmem:[%s6856_s7 + $0xc8] sm:$0xff]  ;;  %v5231_v12 = vld [vmem:[%s6856_s7 + $0x40] sm:$0xff]  ;;  %v5262_v56 = vld [vmem:[%s6856_s7 + $0x138] sm:$0xff] }
 0x3d9   : > { %3446 = vmatpush.bf16.msra.mxu3 %v5252_v7  ;;  %v2857_v4 = vadd.f32 %v2853_v0, %v2831_v58  ;;  %v5239_v14 = vld [vmem:[%s6856_s7 + $0x80] sm:$0xff]  ;;  %v5270_v47 = vld [vmem:[%s6856_s7 + $0x178] sm:$0xff]  ;;  %v5261_v16 = vld [vmem:[%s6856_s7 + $0x130] sm:$0xff] }
 0x3da   : > { %3408 = vmatpush.bf16.msra.mxu0 %v5227_v21  ;;  %v2858_v63 = vmax.f32 %v2856_v57, 0.0  ;;  %v5247_v53 = vld [vmem:[%s6856_s7 + $0xc0] sm:$0xff]  ;;  %v5278_v15 = vld [vmem:[%s6856_s7 + $0x1b8] sm:$0xff]  ;;  %v5269_v5 = vld [vmem:[%s6856_s7 + $0x170] sm:$0xff] }
 0x3db   : > { %3421 = vmatpush.bf16.msra.mxu1 %v5235_v11  ;;  %v2859_v8 = vmax.f32 %v2857_v4, 0.0  ;;  %v5286_v52 = vld [vmem:[%s6856_s7 + $0x1f8] sm:$0xff]  ;;  %v5277_v28 = vld [vmem:[%s6856_s7 + $0x1b0] sm:$0xff]  ;;  %v5260_v7 = vld [vmem:[%s6856_s7 + $0x128] sm:$0xff] }
 0x3dc   : > { %3434 = vmatpush.bf16.msra.mxu2 %v5243_v22  ;;  %2862 = vst [vmem:[#allocation1] ss:$4 sm:$0xff] %v2858_v63  ;;  %v5285_v18 = vld [vmem:[%s6856_s7 + $0x1f0] sm:$0xff]  ;;  %v5268_v21 = vld [vmem:[%s6856_s7 + $0x168] sm:$0xff]  ;;  %v5267_v25 = vld [vmem:[%s6856_s7 + $0x160] sm:$0xff] }
 0x3dd   : > { %3447 = vmatpush.bf16.msra.mxu3 %v5251_v23  ;;  %2864 = vst [vmem:[#allocation1 + $0x20] ss:$4 sm:$0xff] %v2859_v8  ;;  %v5276_v11 = vld [vmem:[%s6856_s7 + $0x1a8] sm:$0xff]  ;;  %v5259_v23 = vld [vmem:[%s6856_s7 + $0x120] sm:$0xff]  ;;  %v5258_v29 = vld [vmem:[%s6856_s7 + $0x118] sm:$0xff] }
 0x3de   : > { %3409 = vmatpush.bf16.msra.mxu0 %v5226_v26  ;;  %v5284_v22 = vld [vmem:[%s6856_s7 + $0x1e8] sm:$0xff]  ;;  %v5275_v26 = vld [vmem:[%s6856_s7 + $0x1a0] sm:$0xff]  ;;  %v5266_v30 = vld [vmem:[%s6856_s7 + $0x158] sm:$0xff] }
 0x3df   : > { %3422 = vmatpush.bf16.msra.mxu1 %v5234_v27  ;;  %v5283_v27 = vld [vmem:[%s6856_s7 + $0x1e0] sm:$0xff]  ;;  %v5274_v31 = vld [vmem:[%s6856_s7 + $0x198] sm:$0xff]  ;;  %v5273_v34 = vld [vmem:[%s6856_s7 + $0x190] sm:$0xff] }
 0x3e0   : > { %3435 = vmatpush.bf16.msra.mxu2 %v5242_v20  ;;  %v5282_v32 = vld [vmem:[%s6856_s7 + $0x1d8] sm:$0xff]  ;;  %v5257_v20 = vld [vmem:[%s6856_s7 + $0x110] sm:$0xff]  ;;  %v5256_v36 = vld [vmem:[%s6856_s7 + $0x108] sm:$0xff] }
 0x3e1   : > { %3448 = vmatpush.bf16.msra.mxu3 %v5250_v33  ;;  %v5265_v33 = vld [vmem:[%s6856_s7 + $0x150] sm:$0xff]  ;;  %v5264_v37 = vld [vmem:[%s6856_s7 + $0x148] sm:$0xff]  ;;  %v5255_v40 = vld [vmem:[%s6856_s7 + $0x100] sm:$0xff] }
 0x3e2   : > { %3410 = vmatpush.bf16.msra.mxu0 %v5225_v44  ;;  %v5281_v35 = vld [vmem:[%s6856_s7 + $0x1d0] sm:$0xff]  ;;  %v5272_v38 = vld [vmem:[%s6856_s7 + $0x188] sm:$0xff]  ;;  %v5263_v41 = vld [vmem:[%s6856_s7 + $0x140] sm:$0xff] }
 0x3e3   : > { %3423 = vmatpush.bf16.msra.mxu1 %v5233_v45  ;;  %v2867_v9 = vld.sshfl [vmem:[#allocation1 + $0x10] sm:$0xff pattern:$0x73625140]  ;;  %v2868_v13 = vld.sshfl [vmem:[#allocation1 + $0x18] sm:$0xff pattern:$0x73625140] }
 0x3e4   : > { %3436 = vmatpush.bf16.msra.mxu2 %v5241_v49  ;;  %v2883_v60 = vpack.c.bf16 %v2867_v9, %v2867_v9  ;;  %v2884_v24 = vpack.c.bf16 %v2868_v13, %v2868_v13  ;;  %v2865_v2 = vld.sshfl [vmem:[#allocation1] sm:$0xff pattern:$0x73625140]  ;;  %v2866_v17 = vld.sshfl [vmem:[#allocation1 + $0x8] sm:$0xff pattern:$0x73625140] }
 0x3e5   : > { %3449 = vmatpush.bf16.msra.mxu3 %v5249_v50  ;;  %v2881_v6 = vpack.c.bf16 %v2865_v2, %v2865_v2  ;;  %v2882_v19 = vpack.c.bf16 %v2866_v17, %v2866_v17  ;;  %v5280_v39 = vld [vmem:[%s6856_s7 + $0x1c8] sm:$0xff]  ;;  %v5271_v42 = vld [vmem:[%s6856_s7 + $0x180] sm:$0xff]  ;;  %v2871_v46 = vld.sshfl [vmem:[#allocation1 + $0x30] sm:$0xff pattern:$0x73625140] }
 0x3e6   : > { %3411 = vmatpush.bf16.msra.mxu0 %v5224_v61  ;;  %v5279_v43 = vld [vmem:[%s6856_s7 + $0x1c0] sm:$0xff]  ;;  %v2870_v45 = vld.sshfl [vmem:[#allocation1 + $0x28] sm:$0xff pattern:$0x73625140]  ;;  %v2887_v51 = vpack.c.bf16 %v2871_v46, %v2871_v46  ;;  %v5420_v63 = vld [vmem:[#allocation16] ss:$0 sm:$0xff] }
 0x3e7   : > { %3424 = vmatpush.bf16.msra.mxu1 %v5232_v62  ;;  %v2869_v44 = vld.sshfl [vmem:[#allocation1 + $0x20] sm:$0xff pattern:$0x73625140]  ;;  %v2872_v48 = vld.sshfl [vmem:[#allocation1 + $0x38] sm:$0xff pattern:$0x73625140]  ;;  %v2886_v50 = vpack.c.bf16 %v2870_v45, %v2870_v45 }
 0x3e8   : > { %3437 = vmatpush.bf16.msra.mxu2 %v5240_v1  ;;  %v2885_v49 = vpack.c.bf16 %v2869_v44, %v2869_v44  ;;  %v2888_v54 = vpack.c.bf16 %v2872_v48, %v2872_v48 }
 0x3e9   : > { %3450 = vmatpush.bf16.msra.mxu3 %v5248_v3 }
 0x3ea   : > { %3412 = vmatpush.bf16.msra.mxu0 %v5223_v10 }
 0x3eb   : > { %3425 = vmatpush.bf16.msra.mxu1 %v5231_v12 }
 0x3ec   : > { %3438 = vmatpush.bf16.msra.mxu2 %v5239_v14 }
 0x3ed   : > { %3451 = vmatpush.bf16.msra.mxu3 %v5247_v53  ;;  %3413 = vmatmul.bf16.vlgmr.msra.gmra.mxu0 %v2881_v6 }
 0x3ee   : > { %3457 = vmatpush.bf16.msrb.mxu0 %v5262_v56  ;;  %3426 = vmatmul.bf16.vlgmr.msra.gmra.mxu1 %v2882_v19 }
 0x3ef   : > { %3470 = vmatpush.bf16.msrb.mxu1 %v5270_v47  ;;  %3439 = vmatmul.bf16.vlgmr.msra.gmra.mxu2 %v2883_v60 }
 0x3f0   : > { %3483 = vmatpush.bf16.msrb.mxu2 %v5278_v15  ;;  %3452 = vmatmul.bf16.vlgmr.msra.gmra.mxu3 %v2884_v24 }
 0x3f1   : > { %3496 = vmatpush.bf16.msrb.mxu3 %v5286_v52 }
 0x3f2   : > { %3458 = vmatpush.bf16.msrb.mxu0 %v5261_v16 }
 0x3f3   : > { %3471 = vmatpush.bf16.msrb.mxu1 %v5269_v5 }
 0x3f4   : > { %3484 = vmatpush.bf16.msrb.mxu2 %v5277_v28 }
 0x3f5   : > { %3497 = vmatpush.bf16.msrb.mxu3 %v5285_v18 }
 0x3f6   : > { %3459 = vmatpush.bf16.msrb.mxu0 %v5260_v7 }
 0x3f7   : > { %3472 = vmatpush.bf16.msrb.mxu1 %v5268_v21 }
 0x3f8   : > { %3485 = vmatpush.bf16.msrb.mxu2 %v5276_v11 }
 0x3f9   : > { %3498 = vmatpush.bf16.msrb.mxu3 %v5284_v22 }
 0x3fa   : > { %3460 = vmatpush.bf16.msrb.mxu0 %v5259_v23 }
 0x3fb   : > { %3473 = vmatpush.bf16.msrb.mxu1 %v5267_v25 }
 0x3fc   : > { %3486 = vmatpush.bf16.msrb.mxu2 %v5275_v26 }
 0x3fd   : > { %3499 = vmatpush.bf16.msrb.mxu3 %v5283_v27 }
 0x3fe   : > { %3461 = vmatpush.bf16.msrb.mxu0 %v5258_v29 }
 0x3ff   : > { %3474 = vmatpush.bf16.msrb.mxu1 %v5266_v30 }
 0x400   : > { %3487 = vmatpush.bf16.msrb.mxu2 %v5274_v31 }
 0x401   : > { %3500 = vmatpush.bf16.msrb.mxu3 %v5282_v32 }
 0x402   : > { %3462 = vmatpush.bf16.msrb.mxu0 %v5257_v20 }
 0x403   : > { %3475 = vmatpush.bf16.msrb.mxu1 %v5265_v33 }
 0x404   : > { %3488 = vmatpush.bf16.msrb.mxu2 %v5273_v34 }
 0x405   : > { %3501 = vmatpush.bf16.msrb.mxu3 %v5281_v35 }
 0x406   : > { %3463 = vmatpush.bf16.msrb.mxu0 %v5256_v36 }
 0x407   : > { %3476 = vmatpush.bf16.msrb.mxu1 %v5264_v37 }
 0x408   : > { %3489 = vmatpush.bf16.msrb.mxu2 %v5272_v38 }
 0x409   : > { %3502 = vmatpush.bf16.msrb.mxu3 %v5280_v39 }
 0x40a   : > { %3464 = vmatpush.bf16.msrb.mxu0 %v5255_v40 }
 0x40b   : > { %3477 = vmatpush.bf16.msrb.mxu1 %v5263_v41 }
 0x40c   : > { %3490 = vmatpush.bf16.msrb.mxu2 %v5271_v42 }
 0x40d   : > { %3503 = vmatpush.bf16.msrb.mxu3 %v5279_v43  ;;  %3465 = vmatmul.bf16.vlgmr.msrb.gmra.mxu0 %v2885_v49 }
 0x40e   : > { %3478 = vmatmul.bf16.vlgmr.msrb.gmra.mxu1 %v2886_v50 }
 0x40f   : > { %3491 = vmatmul.bf16.vlgmr.msrb.gmra.mxu2 %v2887_v51 }
 0x410   : > { %3504 = vmatmul.bf16.vlgmr.msrb.gmra.mxu3 %v2888_v54 }
 0x46a   : > { %v3414_v55 = vpop.f32.mrf.mxu0 }
 0x46b   : > { %v3427_v57 = vpop.f32.mrf.mxu1  ;;  %v3415_v3 = vadd.f32 %v5420_v63, %v3414_v55 }
 0x46d   : > { %v3428_v4 = vadd.f32 %v3427_v57, %v3415_v3 }
 0x472   : > { %v3440_v58 = vpop.f32.mrf.mxu2  ;;  %v3416_v61 = vpop.f32.mrf.mxu0 }
 0x473   : > { %v3453_v59 = vpop.f32.mrf.mxu3  ;;  %v3429_v62 = vpop.f32.mrf.mxu1  ;;  %v3441_v8 = vadd.f32 %v3440_v58, %v3428_v4 }
 0x475   : > { %v3454_v10 = vadd.f32 %v3453_v59, %v3441_v8 }
 0x47a   : > { %v3442_v0 = vpop.f32.mrf.mxu2 }
 0x47b   : > { %v3455_v1 = vpop.f32.mrf.mxu3 }
 0x48a   : > { %v3466_v12 = vpop.f32.mrf.mxu0 }
 0x48b   : > { %v3479_v14 = vpop.f32.mrf.mxu1  ;;  %v3467_v53 = vadd.f32 %v3466_v12, %v3454_v10 }
 0x48d   : > { %v3480_v56 = vadd.f32 %v3479_v14, %v3467_v53 }
 0x492   : > { %v3492_v47 = vpop.f32.mrf.mxu2  ;;  %v3468_v16 = vpop.f32.mrf.mxu0 }
 0x493   : > { %v3505_v15 = vpop.f32.mrf.mxu3  ;;  %v3493_v52 = vadd.f32 %v3492_v47, %v3480_v56  ;;  %v3481_v5 = vpop.f32.mrf.mxu1 }
 0x495   : > { %v3506_v9 = vadd.f32 %v3505_v15, %v3493_v52 }
 0x497   : > { %3510 = vst.msk [vmem:[#allocation18] sm:$0x3] %vm3509_vm13, %v3506_v9 }
 0x49a   : > { %v3494_v13 = vpop.f32.mrf.mxu2 }
 0x49b   : > { %v3507_v60 = vpop.f32.mrf.mxu3 }
 0x49c PF: > { %p5364_p3 = scmp.eq.s32.totalorder %s5834_s13, 3  ;;  %s5762_s25 = smov [#allocation18]  }
 0x49d   : > { %s3517_s27 = sshll.u32 %s5762_s25, 4  ;;  %s3519_s15 = sshll.u32 %s6858_s9, 4  ;;  %s3518_s27 = int_to_ptr.vmem [resolvable:$true] %s3517_s27  ;;  %s3520_s15 = int_to_ptr.hbm [resolvable:$true] %s3519_s15 }
 0x49e   : > { %5320 = dma.vmem_to_hbm [thread:$0]  (%p5364_p3), %s3518_s27, 32, %s3520_s15, [#allocation6]  }
 0x49f   : > { %5730 = dma.done.wait (%p5364_p3), [#allocation6], 32  }
 0x4a0   : > { %5732 = vsyncadd (%p5364_p3), [#allocation6], 4294967264 }
 0x4a1 PF: > { %p24_p4 = scmp.ge.s32.totalorder %s5888_s24, 6   ;;  %s6876_s30 = smov %s5739_s10 }
 0x4a2   : > { %s6877_s10 = smov %s5743_s11  ;;  %s6878_s11 = smov %s5899_s16 }
 0x4a3   : > { %s6879_s12 = smov %s5888_s24  ;;  %26 = sbr.rel (!%p24_p4) target bundleno = 11 (0xb), region = 135 }
 0x4a8   :  { %3533 = vsyncpa [#allocation5], 1 }
 0x4a9   :  { %3535 = vsyncpa [#allocation5 + $0x1], 1 }
 0x4aa   :  { %3536 = vsyncpa [#allocation8], 1 }
 0x4ab   :  { %3537 = vsyncpa [#allocation11], 1 }
 0x4ac   :  { %3538 = vsyncpa [#allocation14], 1 }
 0x4ad   :  { %3540 = vsyncpa [#allocation14 + $0x1], 1 }
 0x4ae   :  { %3541 = vsyncpa [#allocation17], 1 }
 0x4af   :  { %3542 = vsyncpa [#allocation6], 1 }
 0x4b0   :  { %3544 = vsyncpa [#allocation6 + $0x1], 1 }

</bundles_post_ra>
